<compile_context>
chip_gen: v6e
topology: v6e:2x2x1
jax: 0.10.0
libtpu: 0.0.40
codegen_flags: <defaults>
</compile_context>

<pallas_src>
import jax
import jax.numpy as jnp
from jax.experimental import pallas as pl
from jax.experimental.pallas import tpu as pltpu  # noqa: F401  (TPU backend)

FILTER_SIZES = (2, 3, 4)


def _make_fused_kernel(B, L, D, V, F, H, C):
    TB = 2 * B  # q1 and q2 stacked along the batch axis

    def kernel(ids_ref, emb_ref,
               w2_ref, w3_ref, w4_ref, b2_ref, b3_ref, b4_ref,
               wl_ref, bl_ref, wf_ref, bf_ref,
               logit_ref, prob_ref):
        # ---------------- embedding lookup (in-kernel, one-hot matmul) -------
        # Exact: each row of `onehot` has a single 1.0, so the matmul equals a
        # gather.  Keeps the gathered [2B, L, D] activations entirely in VMEM.
        ids = ids_ref[...]                                          # [2B, L] i32
        onehot = (jax.lax.broadcasted_iota(jnp.int32, (TB, L, V), 2)
                  == ids[:, :, None]).astype(jnp.float32)           # [2B, L, V]
        x = jnp.dot(onehot.reshape(TB * L, V), emb_ref[...],
                    preferred_element_type=jnp.float32)             # [2B*L, D]
        x = x.reshape(TB, L, D)

        # ------------- conv(k, D) + bias + ReLU + max-pool over time ---------
        # im2col: batch folded into M, the k taps folded into K -> one MXU
        # matmul per filter size.
        pooled = []
        for k, w_ref, b_ref in zip(FILTER_SIZES,
                                   (w2_ref, w3_ref, w4_ref),
                                   (b2_ref, b3_ref, b4_ref)):
            l_out = L - k + 1
            cols = jnp.concatenate([x[:, j:j + l_out, :] for j in range(k)],
                                   axis=-1)                         # [2B, l_out, k*D]
            acc = jnp.dot(cols.reshape(TB * l_out, k * D), w_ref[...],
                          preferred_element_type=jnp.float32)       # [2B*l_out, F]
            acc = jnp.maximum(acc + b_ref[...], 0.0)                # bias + ReLU
            pooled.append(jnp.max(acc.reshape(TB, l_out, F), axis=1))  # [2B, F]

        q = jnp.concatenate(pooled, axis=-1)                        # [2B, 3F]
        q1 = q[:B]
        q2 = q[B:]
        # TODO(synk): nn.Dropout omitted (inference / eval mode => identity).

        # ------------- head: cat features -> linear -> ReLU -> fc -> softmax -
        feats = jnp.concatenate([q1, q2, q1 - q2, q1 * q2], axis=-1)  # [B, 4H]
        proj = jnp.maximum(
            jnp.dot(feats, wl_ref[...], preferred_element_type=jnp.float32)
            + bl_ref[...], 0.0)                                     # [B, H]
        logit = (jnp.dot(proj, wf_ref[...], preferred_element_type=jnp.float32)
                 + bf_ref[...])                                     # [B, C]
        logit_ref[...] = logit
        m = jnp.max(logit, axis=-1, keepdims=True)
        e = jnp.exp(logit - m)
        prob_ref[...] = e / jnp.sum(e, axis=-1, keepdims=True)

    return kernel


def textcnn_forward(q1_ids, q2_ids, params):
    emb = params["embeddings"]
    V, D = emb.shape
    B, L = q1_ids.shape
    F = params["conv_bs"][0].shape[1]
    H = F * len(FILTER_SIZES)
    C = params["b_fc"].shape[1]

    # Conv weights stored [k, D, F] -> im2col form [k*D, F].
    conv_ws = tuple(w.reshape(-1, F) for w in params["conv_ws"])

    # Stack q1 / q2 along batch: both towers run in one pass.
    ids = jnp.concatenate([q1_ids, q2_ids], axis=0).astype(jnp.int32)  # [2B, L]

    kernel = _make_fused_kernel(B, L, D, V, F, H, C)
    logit, prob = pl.pallas_call(
        kernel,
        out_shape=(jax.ShapeDtypeStruct((B, C), jnp.float32),
                   jax.ShapeDtypeStruct((B, C), jnp.float32)),
    )(ids, emb, *conv_ws, *params["conv_bs"],
      params["w_lin"], params["b_lin"], params["w_fc"], params["b_fc"])
    return logit, prob


# --------------------------- pure-JAX reference ------------------------------
def _reference(q1_ids, q2_ids, params):
    emb = params["embeddings"]

    def conv_pool(x):
        outs = []
        for k, w, b in zip(FILTER_SIZES, params["conv_ws"], params["conv_bs"]):
            l_out = x.shape[1] - k + 1
            acc = sum(jnp.einsum("bld,df->blf", x[:, j:j + l_out, :], w[j])
                      for j in range(k))
            acc = jnp.maximum(acc + b, 0.0)
            outs.append(jnp.max(acc, axis=1))
        return jnp.concatenate(outs, axis=-1)

    q1 = conv_pool(jnp.take(emb, q1_ids, axis=0))
    q2 = conv_pool(jnp.take(emb, q2_ids, axis=0))
    feats = jnp.concatenate([q1, q2, q1 - q2, q1 * q2], axis=-1)
    proj = jnp.maximum(feats @ params["w_lin"] + params["b_lin"], 0.0)
    logit = proj @ params["w_fc"] + params["b_fc"]
    return logit, jax.nn.softmax(logit, axis=-1)


if __name__ == "__main__":
    B, L, D, F, V, C = 2, 16, 32, 8, 20, 2   # batch, seq, embed, filters, vocab, labels
    H = F * len(FILTER_SIZES)                # 24

    key = jax.random.PRNGKey(0)
    keys = jax.random.split(key, 12)

    params = {
        "embeddings": jax.random.normal(keys[0], (V, D), jnp.float32),
        "conv_ws": tuple(0.1 * jax.random.normal(keys[1 + i], (k, D, F), jnp.float32)
                         for i, k in enumerate(FILTER_SIZES)),
        "conv_bs": tuple(0.1 * jax.random.normal(keys[4 + i], (1, F), jnp.float32)
                         for i in range(len(FILTER_SIZES))),
        # nn.Linear(4*3F -> 3F): stored as [in, out] (no block reshape).
        "w_lin": 0.1 * jax.random.normal(keys[7], (4 * H, H), jnp.float32),
        "b_lin": 0.1 * jax.random.normal(keys[8], (1, H), jnp.float32),
        # nn.Linear(3F -> nums_label): stored as [in, out]
        "w_fc": 0.1 * jax.random.normal(keys[9], (H, C), jnp.float32),
        "b_fc": 0.1 * jax.random.normal(keys[10], (1, C), jnp.float32),
    }

    q1_ids = jax.random.randint(keys[11], (B, L), 0, V)
    q2_ids = jax.random.randint(jax.random.fold_in(key, 99), (B, L), 0, V)

    logit, prob = textcnn_forward(q1_ids, q2_ids, params)
    jax.block_until_ready((logit, prob))

    ref_logit, ref_prob = _reference(q1_ids, q2_ids, params)
    assert logit.shape == (B, C) and prob.shape == (B, C)
    assert bool(jnp.allclose(logit, ref_logit, rtol=1e-3, atol=1e-3)), "logit mismatch"
    assert bool(jnp.allclose(prob, ref_prob, rtol=1e-3, atol=1e-3)), "prob mismatch"
    print("KERNEL_OK")
</pallas_src>

<mosaic_0001>
module attributes {stable_mosaic.version = 11 : i64} {
  func.func @kernel(%arg0: memref<4x16xi32, #tpu.memory_space<vmem>>, %arg1: memref<20x32xf32, #tpu.memory_space<vmem>>, %arg2: memref<64x8xf32, #tpu.memory_space<vmem>>, %arg3: memref<96x8xf32, #tpu.memory_space<vmem>>, %arg4: memref<128x8xf32, #tpu.memory_space<vmem>>, %arg5: memref<1x8xf32, #tpu.memory_space<vmem>>, %arg6: memref<1x8xf32, #tpu.memory_space<vmem>>, %arg7: memref<1x8xf32, #tpu.memory_space<vmem>>, %arg8: memref<96x24xf32, #tpu.memory_space<vmem>>, %arg9: memref<1x24xf32, #tpu.memory_space<vmem>>, %arg10: memref<24x2xf32, #tpu.memory_space<vmem>>, %arg11: memref<1x2xf32, #tpu.memory_space<vmem>>, %arg12: memref<2x2xf32, #tpu.memory_space<vmem>>, %arg13: memref<2x2xf32, #tpu.memory_space<vmem>>) attributes {dimension_semantics = [], scalar_prefetch = 0 : i64, scratch_operands = 0 : i64, tpu.core_type = #tpu.core_type<tc>} {
    %c0 = arith.constant 0 : index
    %c0_0 = arith.constant 0 : index
    %0 = vector.load %arg0[%c0, %c0_0] : memref<4x16xi32, #tpu.memory_space<vmem>>, vector<4x16xi32>
    %1 = tpu.iota {dimensions = array<i32: 2>} : vector<4x16x20xi32>
    %2 = vector.shape_cast %0 : vector<4x16xi32> to vector<4x16x1xi32>
    %3 = vector.broadcast %2 : vector<4x16x1xi32> to vector<4x16x20xi32>
    %4 = arith.cmpi eq, %1, %3 : vector<4x16x20xi32>
    %5 = arith.extui %4 : vector<4x16x20xi1> to vector<4x16x20xi32>
    %6 = arith.sitofp %5 : vector<4x16x20xi32> to vector<4x16x20xf32>
    %7 = vector.shape_cast %6 : vector<4x16x20xf32> to vector<64x20xf32>
    %c0_1 = arith.constant 0 : index
    %c0_2 = arith.constant 0 : index
    %8 = vector.load %arg1[%c0_1, %c0_2] : memref<20x32xf32, #tpu.memory_space<vmem>>, vector<20x32xf32>
    %cst = arith.constant dense<0.000000e+00> : vector<64x32xf32>
    %9 = tpu.matmul %7, %8, %cst {dimension_numbers = #tpu.dot_dimension_numbers<[1], [0], [0], [1], [0, 0, 1, 1], [], []>} : vector<64x20xf32>, vector<20x32xf32>, vector<64x32xf32> -> vector<64x32xf32>
    %10 = vector.shape_cast %9 : vector<64x32xf32> to vector<4x16x32xf32>
    %11 = vector.extract_strided_slice %10 {offsets = [0, 0, 0], sizes = [4, 15, 32], strides = [1, 1, 1]} : vector<4x16x32xf32> to vector<4x15x32xf32>
    %12 = vector.extract_strided_slice %10 {offsets = [0, 1, 0], sizes = [4, 15, 32], strides = [1, 1, 1]} : vector<4x16x32xf32> to vector<4x15x32xf32>
    %13 = tpu.concatenate %11, %12 in 2 : vector<4x15x32xf32>, vector<4x15x32xf32> -> vector<4x15x64xf32>
    %14 = vector.shape_cast %13 : vector<4x15x64xf32> to vector<60x64xf32>
    %c0_3 = arith.constant 0 : index
    %c0_4 = arith.constant 0 : index
    %15 = vector.load %arg2[%c0_3, %c0_4] : memref<64x8xf32, #tpu.memory_space<vmem>>, vector<64x8xf32>
    %cst_5 = arith.constant dense<0.000000e+00> : vector<60x8xf32>
    %16 = tpu.matmul %14, %15, %cst_5 {dimension_numbers = #tpu.dot_dimension_numbers<[1], [0], [0], [1], [0, 0, 1, 1], [], []>} : vector<60x64xf32>, vector<64x8xf32>, vector<60x8xf32> -> vector<60x8xf32>
    %c0_6 = arith.constant 0 : index
    %c0_7 = arith.constant 0 : index
    %17 = vector.load %arg5[%c0_6, %c0_7] : memref<1x8xf32, #tpu.memory_space<vmem>>, vector<1x8xf32>
    %18 = vector.broadcast %17 : vector<1x8xf32> to vector<60x8xf32>
    %19 = arith.addf %16, %18 : vector<60x8xf32>
    %cst_8 = arith.constant 0.000000e+00 : f32
    %20 = vector.broadcast %cst_8 : f32 to vector<60x8xf32>
    %21 = arith.maximumf %19, %20 : vector<60x8xf32>
    %22 = vector.shape_cast %21 : vector<60x8xf32> to vector<4x15x8xf32>
    %cst_9 = arith.constant dense<0xFF800000> : vector<4x8xf32>
    %23 = vector.multi_reduction <maximumf>, %22, %cst_9 [1] : vector<4x15x8xf32> to vector<4x8xf32>
    %24 = vector.extract_strided_slice %10 {offsets = [0, 0, 0], sizes = [4, 14, 32], strides = [1, 1, 1]} : vector<4x16x32xf32> to vector<4x14x32xf32>
    %25 = vector.extract_strided_slice %10 {offsets = [0, 1, 0], sizes = [4, 14, 32], strides = [1, 1, 1]} : vector<4x16x32xf32> to vector<4x14x32xf32>
    %26 = vector.extract_strided_slice %10 {offsets = [0, 2, 0], sizes = [4, 14, 32], strides = [1, 1, 1]} : vector<4x16x32xf32> to vector<4x14x32xf32>
    %27 = tpu.concatenate %24, %25, %26 in 2 : vector<4x14x32xf32>, vector<4x14x32xf32>, vector<4x14x32xf32> -> vector<4x14x96xf32>
    %28 = vector.shape_cast %27 : vector<4x14x96xf32> to vector<56x96xf32>
    %c0_10 = arith.constant 0 : index
    %c0_11 = arith.constant 0 : index
    %29 = vector.load %arg3[%c0_10, %c0_11] : memref<96x8xf32, #tpu.memory_space<vmem>>, vector<96x8xf32>
    %cst_12 = arith.constant dense<0.000000e+00> : vector<56x8xf32>
    %30 = tpu.matmul %28, %29, %cst_12 {dimension_numbers = #tpu.dot_dimension_numbers<[1], [0], [0], [1], [0, 0, 1, 1], [], []>} : vector<56x96xf32>, vector<96x8xf32>, vector<56x8xf32> -> vector<56x8xf32>
    %c0_13 = arith.constant 0 : index
    %c0_14 = arith.constant 0 : index
    %31 = vector.load %arg6[%c0_13, %c0_14] : memref<1x8xf32, #tpu.memory_space<vmem>>, vector<1x8xf32>
    %32 = vector.broadcast %31 : vector<1x8xf32> to vector<56x8xf32>
    %33 = arith.addf %30, %32 : vector<56x8xf32>
    %cst_15 = arith.constant 0.000000e+00 : f32
    %34 = vector.broadcast %cst_15 : f32 to vector<56x8xf32>
    %35 = arith.maximumf %33, %34 : vector<56x8xf32>
    %36 = vector.shape_cast %35 : vector<56x8xf32> to vector<4x14x8xf32>
    %cst_16 = arith.constant dense<0xFF800000> : vector<4x8xf32>
    %37 = vector.multi_reduction <maximumf>, %36, %cst_16 [1] : vector<4x14x8xf32> to vector<4x8xf32>
    %38 = vector.extract_strided_slice %10 {offsets = [0, 0, 0], sizes = [4, 13, 32], strides = [1, 1, 1]} : vector<4x16x32xf32> to vector<4x13x32xf32>
    %39 = vector.extract_strided_slice %10 {offsets = [0, 1, 0], sizes = [4, 13, 32], strides = [1, 1, 1]} : vector<4x16x32xf32> to vector<4x13x32xf32>
    %40 = vector.extract_strided_slice %10 {offsets = [0, 2, 0], sizes = [4, 13, 32], strides = [1, 1, 1]} : vector<4x16x32xf32> to vector<4x13x32xf32>
    %41 = vector.extract_strided_slice %10 {offsets = [0, 3, 0], sizes = [4, 13, 32], strides = [1, 1, 1]} : vector<4x16x32xf32> to vector<4x13x32xf32>
    %42 = tpu.concatenate %38, %39, %40, %41 in 2 : vector<4x13x32xf32>, vector<4x13x32xf32>, vector<4x13x32xf32>, vector<4x13x32xf32> -> vector<4x13x128xf32>
    %43 = vector.shape_cast %42 : vector<4x13x128xf32> to vector<52x128xf32>
    %c0_17 = arith.constant 0 : index
    %c0_18 = arith.constant 0 : index
    %44 = vector.load %arg4[%c0_17, %c0_18] : memref<128x8xf32, #tpu.memory_space<vmem>>, vector<128x8xf32>
    %cst_19 = arith.constant dense<0.000000e+00> : vector<52x8xf32>
    %45 = tpu.matmul %43, %44, %cst_19 {dimension_numbers = #tpu.dot_dimension_numbers<[1], [0], [0], [1], [0, 0, 1, 1], [], []>} : vector<52x128xf32>, vector<128x8xf32>, vector<52x8xf32> -> vector<52x8xf32>
    %c0_20 = arith.constant 0 : index
    %c0_21 = arith.constant 0 : index
    %46 = vector.load %arg7[%c0_20, %c0_21] : memref<1x8xf32, #tpu.memory_space<vmem>>, vector<1x8xf32>
    %47 = vector.broadcast %46 : vector<1x8xf32> to vector<52x8xf32>
    %48 = arith.addf %45, %47 : vector<52x8xf32>
    %cst_22 = arith.constant 0.000000e+00 : f32
    %49 = vector.broadcast %cst_22 : f32 to vector<52x8xf32>
    %50 = arith.maximumf %48, %49 : vector<52x8xf32>
    %51 = vector.shape_cast %50 : vector<52x8xf32> to vector<4x13x8xf32>
    %cst_23 = arith.constant dense<0xFF800000> : vector<4x8xf32>
    %52 = vector.multi_reduction <maximumf>, %51, %cst_23 [1] : vector<4x13x8xf32> to vector<4x8xf32>
    %53 = tpu.concatenate %23, %37, %52 in 1 : vector<4x8xf32>, vector<4x8xf32>, vector<4x8xf32> -> vector<4x24xf32>
    %54 = vector.extract_strided_slice %53 {offsets = [0, 0], sizes = [2, 24], strides = [1, 1]} : vector<4x24xf32> to vector<2x24xf32>
    %55 = vector.extract_strided_slice %53 {offsets = [2, 0], sizes = [2, 24], strides = [1, 1]} : vector<4x24xf32> to vector<2x24xf32>
    %56 = arith.subf %54, %55 : vector<2x24xf32>
    %57 = arith.mulf %54, %55 : vector<2x24xf32>
    %58 = tpu.concatenate %54, %55, %56, %57 in 1 : vector<2x24xf32>, vector<2x24xf32>, vector<2x24xf32>, vector<2x24xf32> -> vector<2x96xf32>
    %c0_24 = arith.constant 0 : index
    %c0_25 = arith.constant 0 : index
    %59 = vector.load %arg8[%c0_24, %c0_25] : memref<96x24xf32, #tpu.memory_space<vmem>>, vector<96x24xf32>
    %cst_26 = arith.constant dense<0.000000e+00> : vector<2x24xf32>
    %60 = tpu.matmul %58, %59, %cst_26 {dimension_numbers = #tpu.dot_dimension_numbers<[1], [0], [0], [1], [0, 0, 1, 1], [], []>} : vector<2x96xf32>, vector<96x24xf32>, vector<2x24xf32> -> vector<2x24xf32>
    %c0_27 = arith.constant 0 : index
    %c0_28 = arith.constant 0 : index
    %61 = vector.load %arg9[%c0_27, %c0_28] : memref<1x24xf32, #tpu.memory_space<vmem>>, vector<1x24xf32>
    %62 = vector.broadcast %61 : vector<1x24xf32> to vector<2x24xf32>
    %63 = arith.addf %60, %62 : vector<2x24xf32>
    %cst_29 = arith.constant 0.000000e+00 : f32
    %64 = vector.broadcast %cst_29 : f32 to vector<2x24xf32>
    %65 = arith.maximumf %63, %64 : vector<2x24xf32>
    %c0_30 = arith.constant 0 : index
    %c0_31 = arith.constant 0 : index
    %66 = vector.load %arg10[%c0_30, %c0_31] : memref<24x2xf32, #tpu.memory_space<vmem>>, vector<24x2xf32>
    %cst_32 = arith.constant dense<0.000000e+00> : vector<2x2xf32>
    %67 = tpu.matmul %65, %66, %cst_32 {dimension_numbers = #tpu.dot_dimension_numbers<[1], [0], [0], [1], [0, 0, 1, 1], [], []>} : vector<2x24xf32>, vector<24x2xf32>, vector<2x2xf32> -> vector<2x2xf32>
    %c0_33 = arith.constant 0 : index
    %c0_34 = arith.constant 0 : index
    %68 = vector.load %arg11[%c0_33, %c0_34] : memref<1x2xf32, #tpu.memory_space<vmem>>, vector<1x2xf32>
    %69 = vector.broadcast %68 : vector<1x2xf32> to vector<2x2xf32>
    %70 = arith.addf %67, %69 : vector<2x2xf32>
    %c0_35 = arith.constant 0 : index
    %c0_36 = arith.constant 0 : index
    %71 = vector.load %arg12[%c0_35, %c0_36] : memref<2x2xf32, #tpu.memory_space<vmem>>, vector<2x2xf32>
    tpu.vector_store %arg12[%c0_35, %c0_36], %70 {strides = array<i32>} : memref<2x2xf32, #tpu.memory_space<vmem>>, vector<2x2xf32>,
    %cst_37 = arith.constant dense<0xFF800000> : vector<2xf32>
    %72 = vector.multi_reduction <maximumf>, %70, %cst_37 [1] : vector<2x2xf32> to vector<2xf32>
    %73 = vector.shape_cast %72 : vector<2xf32> to vector<2x1xf32>
    %74 = vector.broadcast %73 : vector<2x1xf32> to vector<2x2xf32>
    %75 = arith.subf %70, %74 : vector<2x2xf32>
    %76 = math.exp %75 : vector<2x2xf32>
    %cst_38 = arith.constant dense<0.000000e+00> : vector<2xf32>
    %77 = vector.multi_reduction <add>, %76, %cst_38 [1] : vector<2x2xf32> to vector<2xf32>
    %78 = vector.shape_cast %77 : vector<2xf32> to vector<2x1xf32>
    %79 = vector.broadcast %78 : vector<2x1xf32> to vector<2x2xf32>
    %80 = arith.divf %76, %79 : vector<2x2xf32>
    %c0_39 = arith.constant 0 : index
    %c0_40 = arith.constant 0 : index
    %81 = vector.load %arg13[%c0_39, %c0_40] : memref<2x2xf32, #tpu.memory_space<vmem>>, vector<2x2xf32>
    tpu.vector_store %arg13[%c0_39, %c0_40], %80 {strides = array<i32>} : memref<2x2xf32, #tpu.memory_space<vmem>>, vector<2x2xf32>,
    return
  }
}

</mosaic_0001>

<bundles_post_ra>
// kernel: tpu_custom_call.1
= control target key start
LH: loop header
LB: loop body
LE: loop exit
PB: predicated region body
PF: predicated region fallthrough
CT: control target
= control target key end

     0   :  { %19 = vsyncpa [#allocation3], 0  ;;  %v46_v0 = vlaneseq  ;;  %vm144_vm0 = vcmask 1043456   ;;  %s6517_s0 = inlined_call_operand.vmem [shape: s32[4,16], index: 0, kind: input, shape index: {}]   ;;  %s6518_s1 = inlined_call_operand.vmem [shape: f32[20,32], index: 1, kind: input, shape index: {}]   ;;  %s6519_s2 = inlined_call_operand.vmem [shape: f32[64,8], index: 2, kind: input, shape index: {}]   ;;  %s6520_s3 = inlined_call_operand.vmem [shape: f32[96,8], index: 3, kind: input, shape index: {}]   ;;  %s6521_s4 = inlined_call_operand.vmem [shape: f32[128,8], index: 4, kind: input, shape index: {}]   ;;  %s6522_s5 = inlined_call_operand.vmem [shape: f32[1,8], index: 5, kind: input, shape index: {}]   ;;  %s6523_s6 = inlined_call_operand.vmem [shape: f32[1,8], index: 6, kind: input, shape index: {}]   ;;  %s6524_s7 = inlined_call_operand.vmem [shape: f32[1,8], index: 7, kind: input, shape index: {}]   ;;  %s6525_s8 = inlined_call_operand.vmem [shape: f32[96,24], index: 8, kind: input, shape index: {}]   ;;  %s6526_s9 = inlined_call_operand.vmem [shape: f32[1,24], index: 9, kind: input, shape index: {}]   ;;  %s6527_s10 = inlined_call_operand.vmem [shape: f32[24,2], index: 10, kind: input, shape index: {}]   ;;  %s6528_s11 = inlined_call_operand.vmem [shape: f32[1,2], index: 11, kind: input, shape index: {}]   ;;  %s6529_s12 = inlined_call_operand.hbm [shape: f32[2,2], index: 12, kind: output, shape index: {0}]   ;;  %s6530_s13 = inlined_call_operand.hbm [shape: f32[2,2], index: 13, kind: output, shape index: {1}]  }
   0x1   :  { %v118_v1 = vld [vmem:[%s6518_s1 + $0x10] sm:$0xf]  ;;  %v117_v2 = vld [vmem:[%s6518_s1 + $0x8] sm:$0xff] }
   0x2   :  { %v5110_v3 = vshrl.u32 %v46_v0, 7  ;;  %4778 = vmatprep.subr.msk.mxu0 %vm144_vm0, %v118_v1 }
   0x3   :  { %20 = vsyncpa [#allocation5], 0  ;;  %v45_v4 = vld [vmem:[%s6517_s0] sm:$0xf]  ;;  %4779 = vmatpush3.msk.msra.mxu0 %vm144_vm0, %v118_v1  ;;  %v5020_v11 = vmov 0.0   ;;  %v47_v15 = vand.u32 127, %v46_v0 }
   0x4   :  { %v116_v5 = vld [vmem:[%s6518_s1] sm:$0xff]  ;;  %v50_v6 = vsub.s32 0, %v5110_v3  ;;  %v61_v7 = vsub.s32 1, %v5110_v3  ;;  %4780 = vmatprep.subr.mxu0 %v117_v2  ;;  %v72_v10 = vsub.s32 2, %v5110_v3  ;;  %v83_v13 = vsub.s32 3, %v5110_v3  ;;  %v710_v32 = vld [vmem:[%s6519_s2 + $0x38] sm:$0xff] }
   0x5   :  { %4781 = vmatpush3.msra.mxu0 %v117_v2  ;;  %vm119_vm1 = vcmask 162816   ;;  %4796 = vmatprep.subr.mxu1 %v710_v32  ;;  %vm261_vm10 = vcmask 1046528   ;;  %s5021_s16 = smov 32   ;;  %v709_v38 = vld [vmem:[%s6519_s2 + $0x30] sm:$0xff]  ;;  %v2220_v41 = vld [vmem:[%s6520_s3 + $0x58] sm:$0xff]  ;;  %v708_v43 = vld [vmem:[%s6519_s2 + $0x28] sm:$0xff] }
   0x6   :  { %v51_v8 = vrot.slane %v45_v4, %v50_v6  ;;  %v62_v9 = vrot.slane %v45_v4, %v61_v7  ;;  %4782 = vmatprep.subr.mxu0 %v116_v5  ;;  %v73_v12 = vrot.slane %v45_v4, %v72_v10  ;;  %v84_v14 = vrot.slane %v45_v4, %v83_v13  ;;  %v2219_v50 = vld [vmem:[%s6520_s3 + $0x50] sm:$0xff]  ;;  %v707_v56 = vld [vmem:[%s6519_s2 + $0x20] sm:$0xff]  ;;  %v2218_v58 = vld [vmem:[%s6520_s3 + $0x48] sm:$0xff]  ;;  %s5022_s14 = smov 96   ;;  %s5028_s18 = smov 16  }
   0x7   :  { %4783 = vmatpush3.msra.mxu0 %v116_v5  ;;  %4797 = vmatpush3.msra.mxu1 %v710_v32  ;;  %vm2772_vm11 = vcmask 1044480   ;;  %v706_v60 = vld [vmem:[%s6519_s2 + $0x18] sm:$0xff]  ;;  %vm2024_vm12 = vcmask 1045504   ;;  %v2217_v4 = vld [vmem:[%s6520_s3 + $0x40] sm:$0xff]  ;;  %v705_v6 = vld [vmem:[%s6519_s2 + $0x10] sm:$0xff]  ;;  %vm5024_vm13 = vmmov 0  }
   0x8   :  { %53 = vbcast.lane.b32.xlu0 %v51_v8, 256  ;;  %64 = vbcast.lane.b32.xlu1 %v62_v9, 256  ;;  %v2216_v10 = vld [vmem:[%s6520_s3 + $0x38] sm:$0xff]  ;;  %v2210_v32 = vld [vmem:[%s6520_s3 + $0x8] sm:$0xff]  ;;  %vm298_vm14 = vcmask 261120   ;;  %vm1085_vm15 = vcmask 523264  }
   0x9   :  { %4824 = vmatprep.subr.mxu0 %v5020_v11  ;;  %4798 = vmatprep.subr.mxu1 %v709_v38  ;;  %vm2347_vm0 = vcmask 785408   ;;  %s5029_s30 = smov 24   ;;  %s5030_s15 = smov 48  }
   0xa   :  { %4799 = vmatpush3.msra.mxu1 %v709_v38  ;;  %s5031_s0 = smov 72  }
   0xb   :  { %4800 = vmatprep.subr.mxu1 %v708_v43 }
   0xc   :  { %57 = vbcast.lane.b32.xlu0 %v51_v8, 264  ;;  %68 = vbcast.lane.b32.xlu1 %v62_v9, 264 }
   0xd   :  { %4801 = vmatpush3.msra.mxu1 %v708_v43 }
   0xe   :  { %4802 = vmatprep.subr.mxu1 %v707_v56 }
   0xf   :  { %4803 = vmatpush3.msra.mxu1 %v707_v56 }
  0x10   :  { %75 = vbcast.lane.b32.xlu0 %v73_v12, 256  ;;  %79 = vbcast.lane.b32.xlu1 %v73_v12, 264  ;;  %v704_v12 = vld [vmem:[%s6519_s2 + $0x8] sm:$0xff] }
  0x11   :  { %4804 = vmatprep.subr.mxu1 %v706_v60 }
  0x12   :  { %4805 = vmatpush3.msra.mxu1 %v706_v60 }
  0x13   :  { %4806 = vmatprep.subr.mxu1 %v705_v6 }
  0x14   :  { %86 = vbcast.lane.b32.xlu0 %v84_v14, 256  ;;  %90 = vbcast.lane.b32.xlu1 %v84_v14, 264  ;;  %v2215_v14 = vld [vmem:[%s6520_s3 + $0x30] sm:$0xff] }
  0x15   :  { %4807 = vmatpush3.msra.mxu1 %v705_v6 }
  0x16   :  { %4808 = vmatprep.subr.mxu1 %v704_v12 }
  0x17   :  { %4809 = vmatpush3.msra.mxu1 %v704_v12 }
  0x7a   :  { %v54_v16 = vpop.permute.xlu0 %53  ;;  %v65_v17 = vpop.permute.xlu1 %64 }
  0x7b   :  { %vm92_vm2 = vcmp.eq.s32.totalorder %v47_v15, %v54_v16  ;;  %vm94_vm3 = vcmp.eq.s32.totalorder %v47_v15, %v65_v17  ;;  %v703_v17 = vld [vmem:[%s6519_s2] sm:$0xff] }
  0x7c   :  { %v4628_v18 = vsel %vm92_vm2, 1.0, %v5020_v11  ;;  %v4630_v21 = vsel %vm94_vm3, 1.0, %v5020_v11  ;;  %4810 = vmatprep.subr.mxu1 %v703_v17  ;;  %vm1988_vm2 = vcmask 63488   ;;  %vm2736_vm3 = vcmask 62464  }
  0x7d   :  { %4784 = vmatprep.mubr.msk.f32.mxu0 %vm119_vm1, %v4628_v18  ;;  %v2214_v18 = vld [vmem:[%s6520_s3 + $0x28] sm:$0xff]  ;;  %4811 = vmatpush3.msra.mxu1 %v703_v17 }
  0x7e   :  { %v58_v19 = vpop.permute.xlu0 %57  ;;  %v69_v20 = vpop.permute.xlu1 %68  ;;  %4869 = vmatprep.subr.mxu1 %v5020_v11 }
  0x7f   :  { %vm93_vm4 = vcmp.eq.s32.totalorder %v47_v15, %v58_v19  ;;  %vm95_vm5 = vcmp.eq.s32.totalorder %v47_v15, %v69_v20 }
  0x80   :  { %v4629_v22 = vsel %vm93_vm4, 1.0, %v5020_v11  ;;  %v4631_v23 = vsel %vm95_vm5, 1.0, %v5020_v11  ;;  %vm4318_vm4 = vcmask 61440   ;;  %vm4358_vm5 = vcmask 1041409  }
  0x81   :  { %4785 = vmatmul.mubr.msk.f32.vlgmr.msra.gmra.mxu0 %vm119_vm1, %v4629_v22 }
  0x82   :  { %4787 = vmatprep.mubr.msk.f32.mxu0 %vm119_vm1, %v4630_v21  ;;  %v76_v24 = vpop.permute.xlu0 %75  ;;  %v80_v25 = vpop.permute.xlu1 %79  ;;  %4825 = vmatpush3.msra.mxu0 %v2220_v41 }
  0x83   :  { %vm96_vm6 = vcmp.eq.s32.totalorder %v47_v15, %v76_v24  ;;  %vm97_vm7 = vcmp.eq.s32.totalorder %v47_v15, %v80_v25  ;;  %4826 = vmatprep.subr.mxu0 %v5020_v11 }
  0x84   :  { %v4632_v26 = vsel %vm96_vm6, 1.0, %v5020_v11  ;;  %v4633_v27 = vsel %vm97_vm7, 1.0, %v5020_v11  ;;  %4827 = vmatpush3.msra.mxu0 %v2219_v50  ;;  %vm4360_vm6 = vcmask 1042434   ;;  %vm4362_vm7 = vcmask 1043459  }
  0x85   :  { %4788 = vmatmul.mubr.msk.f32.gmra.mxu0 %vm119_vm1, %v4631_v23  ;;  %4828 = vmatprep.subr.mxu0 %v5020_v11 }
  0x86   :  { %4790 = vmatprep.mubr.msk.f32.mxu0 %vm119_vm1, %v4632_v26  ;;  %v87_v28 = vpop.permute.xlu0 %86  ;;  %v91_v29 = vpop.permute.xlu1 %90  ;;  %4829 = vmatpush3.msra.mxu0 %v2218_v58 }
  0x87   :  { %vm98_vm8 = vcmp.eq.s32.totalorder %v47_v15, %v87_v28  ;;  %vm99_vm9 = vcmp.eq.s32.totalorder %v47_v15, %v91_v29  ;;  %4830 = vmatprep.subr.mxu0 %v5020_v11  ;;  %v2213_v29 = vld [vmem:[%s6520_s3 + $0x20] sm:$0xff] }
  0x88   :  { %v4634_v30 = vsel %vm98_vm8, 1.0, %v5020_v11  ;;  %v4635_v31 = vsel %vm99_vm9, 1.0, %v5020_v11  ;;  %4831 = vmatpush3.msra.mxu0 %v2217_v4  ;;  %vm4386_vm8 = vcmask 130048   ;;  %vm4404_vm9 = vcmask 195584  }
  0x89   :  { %4791 = vmatmul.mubr.msk.f32.gmra.mxu0 %vm119_vm1, %v4633_v27  ;;  %4832 = vmatprep.subr.mxu0 %v5020_v11 }
  0x8a   :  { %4793 = vmatprep.mubr.msk.f32.mxu0 %vm119_vm1, %v4634_v30  ;;  %4833 = vmatpush3.msra.mxu0 %v2216_v10  ;;  %v2212_v30 = vld [vmem:[%s6520_s3 + $0x18] sm:$0xff] }
  0x8b   :  { %4834 = vmatprep.subr.mxu0 %v5020_v11 }
  0x8c   :  { %4835 = vmatpush3.msra.mxu0 %v2215_v14 }
  0x8d   :  { %4794 = vmatmul.mubr.msk.f32.gmra.mxu0 %vm119_vm1, %v4635_v31  ;;  %4836 = vmatprep.subr.mxu0 %v5020_v11  ;;  %v2211_v31 = vld [vmem:[%s6520_s3 + $0x10] sm:$0xff]  ;;  %vm1986_vm1 = vcmask 64512  }
  0x8e   :  { %4837 = vmatpush3.msra.mxu0 %v2214_v18  ;;  %4848 = vmatprep.mubr.msk.f32.mxu0 %vm5024_vm13, %v5020_v11 }
  0x8f   :  { %4838 = vmatprep.subr.mxu0 %v5020_v11 }
  0x90   :  { %4839 = vmatpush3.msra.mxu0 %v2213_v29 }
  0x91   :  { %4840 = vmatprep.subr.mxu0 %v5020_v11 }
  0x92   :  { %4841 = vmatpush3.msra.mxu0 %v2212_v30 }
  0x93   :  { %4842 = vmatprep.subr.mxu0 %v5020_v11 }
  0x94   :  { %4843 = vmatpush3.msra.mxu0 %v2211_v31 }
  0x95   :  { %4844 = vmatprep.subr.mxu0 %v5020_v11 }
  0x96   :  { %4845 = vmatpush3.msra.mxu0 %v2210_v32 }
  0x97   :  { %4846 = vmatprep.subr.mxu0 %v5020_v11 }
 0x141   :  { %v5142_v33 = vpop.f32.mrf.mxu0 }
 0x142   :  { %v263_v34 = vrot.slane %v5142_v33, 1  ;;  %v2774_v59 = vrot.slane %v5142_v33, 3  ;;  %v2026_v2 = vrot.slane %v5142_v33, 2 }
 0x143   :  { %v5145_v35 = vpop.f32.mrf.mxu0 }
 0x144   :  { %v262_v36 = vrot.slane %v5145_v35, 1  ;;  %276 = vrot.lane.b32.xlu1 %v263_v34, %s5021_s16  ;;  %v2773_v54 = vrot.slane %v5145_v35, 3  ;;  %v2025_v61 = vrot.slane %v5145_v35, 2 }
 0x145   :  { %v5149_v37 = vpop.f32.mrf.mxu0 }
 0x146   :  { %v264_v39 = vsel %vm261_vm10, %v262_v36, %v263_v34  ;;  %v266_v40 = vrot.slane %v5149_v37, 1  ;;  %v2029_v63 = vrot.slane %v5149_v37, 2  ;;  %v2775_v1 = vsel %vm2772_vm11, %v2773_v54, %v2774_v59  ;;  %v2209_v34 = vld [vmem:[%s6520_s3] sm:$0xff] }
 0x147   :  { %274 = vrot.lane.b32.xlu0 %v264_v39, %s5021_s16  ;;  %v5160_v42 = vpop.f32.mrf.mxu0  ;;  %v2027_v5 = vsel %vm2024_vm12, %v2025_v61, %v2026_v2  ;;  %v2777_v7 = vrot.slane %v5149_v37, 3  ;;  %4847 = vmatpush3.msra.mxu0 %v2209_v34  ;;  %v5025_v36 = vmov 1966171168  }
 0x148   :  { %v265_v44 = vrot.slane %v5160_v42, 1  ;;  %280 = vrot.lane.b32.xlu1 %v266_v40, %s5021_s16  ;;  %v2028_v0 = vrot.slane %v5160_v42, 2  ;;  %v2776_v8 = vrot.slane %v5160_v42, 3  ;;  %4922 = vmatprep.subr.mxu0 %v5020_v11  ;;  %v317_v38 = vunpack.c.l.s4 %v5025_v36 }
 0x149   :  { %v5167_v45 = vpop.f32.mrf.mxu0 }
 0x14a   :  { %v267_v46 = vsel %vm261_vm10, %v265_v44, %v266_v40  ;;  %v269_v47 = vrot.slane %v5167_v45, 1  ;;  %v2030_v9 = vsel %vm2024_vm12, %v2028_v0, %v2029_v63  ;;  %v2778_v13 = vsel %vm2772_vm11, %v2776_v8, %v2777_v7 }
 0x14b   :  { %278 = vrot.lane.b32.xlu0 %v267_v46, %s5021_s16  ;;  %v5173_v48 = vpop.f32.mrf.mxu0  ;;  %v2780_v15 = vrot.slane %v5167_v45, 3  ;;  %v2032_v19 = vrot.slane %v5167_v45, 2  ;;  %v318_v39 = vunpack.c.0.s8 %v317_v38  ;;  %v5026_v44 = vmov 1983009808  }
 0x14c   :  { %v268_v49 = vrot.slane %v5173_v48, 1  ;;  %284 = vrot.lane.b32.xlu1 %v269_v47, %s5021_s16  ;;  %v2779_v16 = vrot.slane %v5173_v48, 3  ;;  %v2031_v20 = vrot.slane %v5173_v48, 2  ;;  %v2079_v46 = vunpack.c.l.s4 %v5026_v44 }
 0x14d   :  { %v5180_v51 = vpop.f32.mrf.mxu0  ;;  %v5291_v40 = vsub.s32 %v318_v39, %v5110_v3 }
 0x14e   :  { %v270_v52 = vsel %vm261_vm10, %v268_v49, %v269_v47  ;;  %v272_v53 = vrot.slane %v5180_v51, 1  ;;  %v2035_v21 = vrot.slane %v5180_v51, 2  ;;  %v2781_v23 = vsel %vm2772_vm11, %v2779_v16, %v2780_v15 }
 0x14f   :  { %282 = vrot.lane.b32.xlu0 %v270_v52, %s5021_s16  ;;  %v5187_v55 = vpop.f32.mrf.mxu0  ;;  %v2033_v24 = vsel %vm2024_vm12, %v2031_v20, %v2032_v19  ;;  %v2783_v25 = vrot.slane %v5180_v51, 3 }
 0x150   :  { %v271_v57 = vrot.slane %v5187_v55, 1  ;;  %288 = vrot.lane.b32.xlu1 %v272_v53, %s5021_s16  ;;  %v2034_v22 = vrot.slane %v5187_v55, 2  ;;  %v2782_v26 = vrot.slane %v5187_v55, 3 }
 0x152   :  { %v273_v62 = vsel %vm261_vm10, %v271_v57, %v272_v53  ;;  %v2036_v27 = vsel %vm2024_vm12, %v2034_v22, %v2035_v21  ;;  %v2784_v28 = vsel %vm2772_vm11, %v2782_v26, %v2783_v25  ;;  %vm4406_vm10 = vcmask 392192  }
 0x153   :  { %286 = vrot.lane.b32.xlu0 %v273_v62, %s5021_s16  ;;  %s5023_s16 = smov 64   ;;  %vm4408_vm11 = vcmask 588800   ;;  %vm4586_vm12 = vcmask 9216  }
 0x154   :  { %2785 = vrot.lane.b32.xlu1 %v2775_v1, %s5022_s14 }
 0x157   :  { %2037 = vrot.lane.b32.xlu0 %v2027_v5, %s5023_s16 }
 0x158   :  { %2041 = vrot.lane.b32.xlu1 %v2030_v9, %s5023_s16 }
 0x15b   :  { %2039 = vrot.lane.b32.xlu0 %v2026_v2, %s5023_s16 }
 0x15c   :  { %2789 = vrot.lane.b32.xlu1 %v2778_v13, %s5022_s14 }
 0x15f   :  { %2787 = vrot.lane.b32.xlu0 %v2774_v59, %s5022_s14  ;;  %v2080_v59 = vunpack.c.0.s8 %v2079_v46 }
 0x160   :  { %2791 = vrot.lane.b32.xlu1 %v2777_v7, %s5022_s14 }
 0x163   :  { %2043 = vrot.lane.b32.xlu0 %v2029_v63, %s5023_s16 }
 0x164   :  { %2793 = vrot.lane.b32.xlu1 %v2781_v23, %s5022_s14 }
 0x167   :  { %2045 = vrot.lane.b32.xlu0 %v2033_v24, %s5023_s16 }
 0x168   :  { %2049 = vrot.lane.b32.xlu1 %v2036_v27, %s5023_s16 }
 0x16b   :  { %2047 = vrot.lane.b32.xlu0 %v2032_v19, %s5023_s16 }
 0x16c   :  { %2797 = vrot.lane.b32.xlu1 %v2784_v28, %s5022_s14 }
 0x16f   :  { %2795 = vrot.lane.b32.xlu0 %v2780_v15, %s5022_s14 }
 0x170   :  { %2799 = vrot.lane.b32.xlu1 %v2783_v25, %s5022_s14 }
 0x173   :  { %2051 = vrot.lane.b32.xlu0 %v2035_v21, %s5023_s16 }
 0x1b6   :  { %v277_v41 = vpop.permute.xlu1 %276 }
 0x1b7   :  { %v5295_v43 = vsel %vm298_vm14, %v5142_v33, %v277_v41 }
 0x1b8   :  { %v364_v47 = vcombine.high %v5295_v43, %v5295_v43  ;;  %v371_v49 = vrot.slane %v5295_v43, %v5291_v40 }
 0x1b9   :  { %v275_v50 = vpop.permute.xlu0 %274 }
 0x1ba   :  { %v378_v52 = vrot.slane %v364_v47, %v5291_v40  ;;  %v379_v53 = vcombine.high %v371_v49, %v371_v49  ;;  %v5304_v54 = vsel %vm298_vm14, %v5145_v35, %v275_v50  ;;  %v281_v56 = vpop.permute.xlu1 %280  ;;  %v387_v0 = vrot.slane %v371_v49, %v5291_v40 }
 0x1bb   :  { %v315_v33 = vcombine.high %v5304_v54, %v5304_v54  ;;  %v322_v57 = vrot.slane %v5304_v54, %v5291_v40  ;;  %v5312_v58 = vsel %vm298_vm14, %v5149_v37, %v281_v56  ;;  %v5323_v37 = vsub.s32 %v2080_v59, %v5110_v3 }
 0x1bc   :  { %v380_v60 = vcombine.high %v378_v52, %v378_v52  ;;  %v461_v61 = vcombine.high %v5312_v58, %v5312_v58  ;;  %v401_v62 = vrot.slane %v379_v53, %v5291_v40  ;;  %v468_v35 = vrot.slane %v5312_v58, %v5291_v40 }
 0x1bd   :  { %v329_v63 = vrot.slane %v315_v33, %v5291_v40  ;;  %v330_v1 = vcombine.high %v322_v57, %v322_v57  ;;  %v279_v6 = vpop.permute.xlu0 %278  ;;  %v394_v8 = vrot.slane %v378_v52, %v5291_v40  ;;  %v5328_v10 = vrot.slane %v322_v57, %v5291_v40 }
 0x1be   :  { %v475_v2 = vrot.slane %v461_v61, %v5291_v40  ;;  %v476_v4 = vcombine.high %v468_v35, %v468_v35  ;;  %v408_v5 = vrot.slane %v380_v60, %v5291_v40  ;;  %v285_v7 = vpop.permute.xlu1 %284  ;;  %v767_v9 = vcombine.low %v387_v0, %v401_v62 }
 0x1bf   :  { %v5331_v12 = vrot.slane %v468_v35, %v5291_v40  ;;  %v4648_v13 = vcombine.high %v387_v0, %v401_v62  ;;  %v331_v14 = vcombine.high %v329_v63, %v329_v63  ;;  %v5334_v15 = vrot.slane %v329_v63, %v5291_v40 }
 0x1c0   :  { %v498_v3 = vrot.slane %v476_v4, %v5291_v40  ;;  %v5338_v16 = vrot.slane %v330_v1, %v5291_v40  ;;  %v477_v17 = vcombine.high %v475_v2, %v475_v2  ;;  %v5342_v18 = vsel %vm298_vm14, %v5160_v42, %v279_v6 }
 0x1c1   :  { %v5346_v19 = vsel %vm298_vm14, %v5167_v45, %v285_v7  ;;  %v769_v20 = vcombine.low %v394_v8, %v408_v5  ;;  %v491_v21 = vrot.slane %v475_v2, %v5291_v40  ;;  %v412_v22 = vcombine.high %v5342_v18, %v5342_v18  ;;  %v283_v30 = vpop.permute.xlu0 %282 }
 0x1c2   :  { %v419_v23 = vrot.slane %v5342_v18, %v5291_v40  ;;  %v5354_v24 = vrot.slane %v767_v9, %v5291_v40  ;;  %v506_v42 = vcombine.high %v5331_v12, %v5331_v12  ;;  %v508_v25 = vcombine.high %v498_v3, %v498_v3  ;;  %v289_v0 = vpop.permute.xlu1 %288 }
 0x1c3   :  { %v558_v45 = vcombine.high %v5346_v19, %v5346_v19  ;;  %v5361_v26 = vrot.slane %v4648_v13, %v5291_v40  ;;  %v426_v27 = vrot.slane %v412_v22, %v5291_v40  ;;  %v565_v29 = vrot.slane %v5346_v19, %v5291_v40 }
 0x1c4   :  { %v427_v28 = vcombine.high %v419_v23, %v419_v23  ;;  %v505_v31 = vrot.slane %v477_v17, %v5291_v40  ;;  %v410_v32 = vcombine.high %v394_v8, %v394_v8  ;;  %v435_v34 = vrot.slane %v419_v23, %v5291_v40 }
 0x1c5   :  { %v572_v36 = vrot.slane %v558_v45, %v5291_v40  ;;  %v507_v38 = vcombine.high %v491_v21, %v491_v21  ;;  %v428_v39 = vcombine.high %v426_v27, %v426_v27  ;;  %v442_v41 = vrot.slane %v426_v27, %v5291_v40  ;;  %v287_v1 = vpop.permute.xlu0 %286 }
 0x1c6   :  { %v449_v44 = vrot.slane %v427_v28, %v5291_v40  ;;  %v5371_v46 = vcombine.low %v498_v3, %v506_v42  ;;  %v5373_v47 = vcombine.low %v508_v25, %v491_v21  ;;  %v457_v49 = vcombine.high %v435_v34, %v435_v34 }
 0x1c7   :  { %v5377_v50 = vsel %vm298_vm14, %v5173_v48, %v283_v30  ;;  %v5380_v52 = vrot.slane %v331_v14, %v5291_v40  ;;  %v718_v53 = vcombine.low %v5328_v10, %v5338_v16  ;;  %v573_v56 = vcombine.high %v565_v29, %v565_v29 }
 0x1c8   :  { %v574_v33 = vcombine.high %v572_v36, %v572_v36  ;;  %v5385_v57 = vrot.slane %v769_v20, %v5291_v40  ;;  %v4646_v59 = vcombine.high %v5328_v10, %v5338_v16  ;;  %v456_v60 = vrot.slane %v428_v39, %v5291_v40 }
 0x1c9   :  { %v5390_v61 = vcombine.low %v410_v32, %v435_v34  ;;  %v5392_v48 = vcombine.low %v505_v31, %v507_v38  ;;  %v458_v62 = vcombine.high %v442_v41, %v442_v41  ;;  %v459_v35 = vcombine.high %v449_v44, %v449_v44  ;;  %v2038_v32 = vpop.permute.xlu0 %2037 }
 0x1ca   :  { %v509_v63 = vcombine.high %v5377_v50, %v5377_v50  ;;  %v5400_v5 = vcombine.low %v449_v44, %v457_v49  ;;  %v581_v6 = vrot.slane %v565_v29, %v5291_v40  ;;  %v595_v7 = vrot.slane %v573_v56, %v5291_v40 }
 0x1cb   :  { %v602_v8 = vrot.slane %v574_v33, %v5291_v40  ;;  %v516_v9 = vrot.slane %v5377_v50, %v5291_v40  ;;  %v460_v14 = vcombine.high %v456_v60, %v456_v60  ;;  %v798_v3 = vrot.slane %v5390_v61, %v5291_v40 }
 0x1cc   :  { %v523_v13 = vrot.slane %v509_v63, %v5291_v40  ;;  %v5411_v17 = vrot.slane %v572_v36, %v5291_v40  ;;  %v5415_v20 = vsel %vm298_vm14, %v5180_v51, %v289_v0  ;;  %v5417_v21 = vcombine.low %v459_v35, %v442_v41 }
 0x1cd   :  { %v5419_v22 = vcombine.low %v456_v60, %v458_v62  ;;  %v524_v23 = vcombine.high %v516_v9, %v516_v9  ;;  %v655_v45 = vcombine.high %v5415_v20, %v5415_v20  ;;  %v662_v27 = vrot.slane %v5415_v20, %v5291_v40 }
 0x1ce   :  { %v525_v42 = vcombine.high %v523_v13, %v523_v13  ;;  %v5429_v51 = vsel %vm298_vm14, %v5187_v55, %v287_v1  ;;  %v917_v28 = vcombine.low %v581_v6, %v595_v7  ;;  %v4651_v29 = vcombine.high %v581_v6, %v595_v7 }
 0x1cf   :  { %v964_v30 = vcombine.low %v5411_v17, %v602_v8  ;;  %v546_v31 = vrot.slane %v524_v23, %v5291_v40  ;;  %v532_v34 = vrot.slane %v516_v9, %v5291_v40  ;;  %v669_v36 = vrot.slane %v655_v45, %v5291_v40  ;;  %v2786_v9 = vpop.permute.xlu1 %2785 }
 0x1d0   :  { %v670_v38 = vcombine.high %v662_v27, %v662_v27  ;;  %v5436_v39 = vrot.slane %v662_v27, %v5291_v40  ;;  %v5439_v41 = vcombine.low %v460_v14, %v5331_v12  ;;  %v833_v55 = vrot.slane %v5417_v21, %v5291_v40 }
 0x1d1   :  { %v553_v44 = vrot.slane %v525_v42, %v5291_v40  ;;  %v606_v49 = vcombine.high %v5429_v51, %v5429_v51  ;;  %v868_v56 = vcombine.low %v532_v34, %v546_v31  ;;  %v2061_v62 = vsel %vm1085_vm15, %v5304_v54, %v2038_v32 }
 0x1d2   :  { %v692_v33 = vrot.slane %v670_v38, %v5291_v40  ;;  %v700_v60 = vcombine.high %v5436_v39, %v5436_v39  ;;  %v539_v12 = vrot.slane %v523_v13, %v5291_v40  ;;  %v671_v35 = vcombine.high %v669_v36, %v669_v36 }
 0x1d3   :  { %v685_v63 = vrot.slane %v669_v36, %v5291_v40  ;;  %v613_v0 = vrot.slane %v5429_v51, %v5291_v40  ;;  %v5456_v1 = vrot.slane %v917_v28, %v5291_v40  ;;  %v5459_v6 = vrot.slane %v4651_v29, %v5291_v40 }
 0x1d4   :  { %v5462_v7 = vrot.slane %v964_v30, %v5291_v40  ;;  %v4649_v8 = vcombine.high %v532_v34, %v546_v31  ;;  %v915_v54 = vcombine.low %v539_v12, %v553_v44  ;;  %v4650_v14 = vcombine.high %v539_v12, %v553_v44 }
 0x1d5   :  { %v620_v13 = vrot.slane %v606_v49, %v5291_v40  ;;  %v2077_v23 = vcombine.high %v2061_v62, %v2061_v62  ;;  %v5466_v42 = vrot.slane %v868_v56, %v5291_v40  ;;  %v5468_v45 = vcombine.low %v692_v33, %v700_v60 }
 0x1d6   :  { %v604_v27 = vcombine.high %v5411_v17, %v5411_v17  ;;  %v2084_v28 = vrot.slane %v2061_v62, %v5323_v37  ;;  %v699_v29 = vrot.slane %v671_v35, %v5291_v40  ;;  %v701_v30 = vcombine.high %v685_v63, %v685_v63 }
 0x1d7   :  { %v702_v31 = vcombine.high %v692_v33, %v692_v33  ;;  %v621_v32 = vcombine.high %v613_v0, %v613_v0  ;;  %v629_v34 = vrot.slane %v613_v0, %v5291_v40  ;;  %v2091_v36 = vrot.slane %v2077_v23, %v5323_v37  ;;  %v2042_v23 = vpop.permute.xlu1 %2041 }
 0x1d8   :  { %v2092_v38 = vcombine.high %v2084_v28, %v2084_v28  ;;  %v2809_v44 = vsel %vm2347_vm0, %v2061_v62, %v2786_v9  ;;  %v5478_v49 = vrot.slane %v4649_v8, %v5291_v40  ;;  %v5481_v56 = vrot.slane %v915_v54, %v5291_v40 }
 0x1d9   :  { %v5484_v17 = vrot.slane %v4650_v14, %v5291_v40  ;;  %v622_v60 = vcombine.high %v620_v13, %v620_v13  ;;  %v2093_v12 = vcombine.high %v2091_v36, %v2091_v36  ;;  %v2825_v0 = vcombine.high %v2809_v44, %v2809_v44 }
 0x1da   :  { %v2228_v35 = vcombine.low %v2084_v28, %v2092_v38  ;;  %v5488_v2 = vcombine.low %v702_v31, %v685_v63  ;;  %v5490_v62 = vcombine.low %v699_v29, %v701_v30  ;;  %v5493_v8 = vrot.slane %v620_v13, %v5291_v40 }
 0x1db   :  { %v643_v9 = vrot.slane %v621_v32, %v5291_v40  ;;  %v651_v54 = vcombine.high %v629_v34, %v629_v34  ;;  %v2229_v14 = vcombine.low %v2091_v36, %v2093_v12  ;;  %v2832_v4 = vrot.slane %v2809_v44, %v5291_v40  ;;  %v2790_v16 = vpop.permute.xlu1 %2789 }
 0x1dc   :  { %v2839_v25 = vrot.slane %v2825_v0, %v5291_v40  ;;  %v5499_v33 = vrot.slane %v622_v60, %v5291_v40  ;;  %v5501_v28 = vcombine.low %v604_v27, %v629_v34  ;;  %v2063_v63 = vsel %vm1085_vm15, %v5342_v18, %v2042_v23  ;;  %v2040_v34 = vpop.permute.xlu0 %2039 }
 0x1dd   :  { %v720_v13 = vcombine.low %v5334_v15, %v5380_v52  ;;  %v2236_v29 = vrot.slane %v2228_v35, %v5323_v37  ;;  %v2243_v30 = vrot.slane %v2229_v14, %v5323_v37  ;;  %v2840_v31 = vcombine.high %v2832_v4, %v2832_v4 }
 0x1de   :  { %v2841_v32 = vcombine.high %v2839_v25, %v2839_v25  ;;  %v653_v36 = vcombine.high %v643_v9, %v643_v9  ;;  %v2848_v38 = vrot.slane %v2832_v4, %v5291_v40  ;;  %v2110_v44 = vcombine.high %v2063_v63, %v2063_v63 }
 0x1df   :  { %v4647_v27 = vcombine.high %v5334_v15, %v5380_v52  ;;  %v2244_v60 = vcombine.low %v2236_v29, %v2243_v30  ;;  %v2862_v18 = vrot.slane %v2840_v31, %v5291_v40  ;;  %v5514_v12 = vrot.slane %v2063_v63, %v5323_v37 }
 0x1e0   :  { %v728_v35 = vrot.slane %v718_v53, %v5291_v40  ;;  %v652_v0 = vcombine.high %v5493_v8, %v5493_v8  ;;  %v2869_v4 = vrot.slane %v2841_v32, %v5291_v40  ;;  %v735_v15 = vrot.slane %v4646_v59, %v5291_v40 }
 0x1e1   :  { %v742_v52 = vrot.slane %v720_v13, %v5291_v40  ;;  %v654_v23 = vcombine.high %v5499_v33, %v5499_v33  ;;  %v5530_v14 = vcombine.low %v643_v9, %v651_v54  ;;  %v3200_v29 = vcombine.low %v2848_v38, %v2862_v18  ;;  %4849 = vmatmul.mubr.msk.f32.vlgmr.msra.gmra.mxu0 %vm2347_vm0, %v2244_v60 }
 0x1e2   :  { %v2855_v30 = vrot.slane %v2839_v25, %v5291_v40  ;;  %v749_v31 = vrot.slane %v4647_v27, %v5291_v40  ;;  %v750_v32 = vcombine.low %v728_v35, %v735_v15  ;;  %v2062_v10 = vsel %vm1085_vm15, %v5295_v43, %v2040_v34  ;;  %4851 = vmatprep.mubr.msk.f32.mxu0 %vm5024_vm13, %v5020_v11  ;;  %v2788_v43 = vpop.permute.xlu0 %2787 }
 0x1e3   :  { %v5542_v59 = vcombine.low %v653_v36, %v5493_v8  ;;  %v4676_v9 = vcombine.high %v2848_v38, %v2862_v18  ;;  %v5545_v54 = vrot.slane %v2110_v44, %v5323_v37  ;;  %v2125_v25 = vcombine.high %v5514_v12, %v5514_v12 }
 0x1e4   :  { %v3202_v13 = vcombine.low %v2855_v30, %v2869_v4  ;;  %v4677_v27 = vcombine.high %v2855_v30, %v2869_v4  ;;  %v751_v60 = vcombine.low %v742_v52, %v749_v31  ;;  %v2101_v35 = vrot.slane %v2062_v10, %v5323_v37 }
 0x1e5   :  { %v5551_v34 = vrot.slane %v3200_v29, %v5291_v40  ;;  %v2094_v15 = vcombine.high %v2062_v10, %v2062_v10  ;;  %v2811_v8 = vsel %vm2347_vm0, %v2063_v63, %v2790_v16  ;;  %v799_v36 = vcombine.low %v5354_v24, %v5361_v26 }
 0x1e6   :  { %v758_v38 = vrot.slane %v750_v32, %v5291_v40  ;;  %v765_v44 = vrot.slane %v751_v60, %v5291_v40  ;;  %v2109_v18 = vcombine.high %v2101_v35, %v2101_v35  ;;  %v2913_v53 = vcombine.high %v2811_v8, %v2811_v8 }
 0x1e7   :  { %v5559_v4 = vrot.slane %v4676_v9, %v5291_v40  ;;  %v2920_v52 = vrot.slane %v2811_v8, %v5291_v40  ;;  %v800_v29 = vcombine.low %v5385_v57, %v798_v3  ;;  %v2810_v63 = vsel %vm2347_vm0, %v2062_v10, %v2788_v43 }
 0x1e8   :  { %v5568_v24 = vrot.slane %v3202_v13, %v5291_v40  ;;  %v5571_v26 = vrot.slane %v4677_v27, %v5291_v40  ;;  %v766_v30 = vcombine.low %v758_v38, %v765_v44  ;;  %v2927_v31 = vrot.slane %v2913_v53, %v5291_v40 }
 0x1e9   :  { %v5575_v32 = vrot.slane %v2094_v15, %v5323_v37  ;;  %v5577_v16 = vcombine.low %v2101_v35, %v2109_v18  ;;  %v807_v61 = vrot.slane %v799_v36, %v5291_v40  ;;  %v814_v57 = vrot.slane %v800_v29, %v5291_v40  ;;  %v3192_v35 = vld [vmem:[%s6521_s4 + $0x78] sm:$0xff] }
 0x1ea   :  { %v994_v3 = vrot.slane %v5530_v14, %v5291_v40  ;;  %v5584_v10 = vcombine.low %v5499_v33, %v652_v0  ;;  %4812 = vmatprep.mubr.msk.f32.mxu1 %vm1085_vm15, %v766_v30  ;;  %v2928_v9 = vcombine.high %v2920_v52, %v2920_v52  ;;  %v2881_v53 = vrot.slane %v2810_v63, %v5291_v40  ;;  %v3190_v30 = vld [vmem:[%s6521_s4 + $0x68] sm:$0xff] }
 0x1eb   :  { %v5589_v13 = vcombine.low %v654_v23, %v5436_v39  ;;  %v5592_v27 = vrot.slane %v2920_v52, %v5291_v40  ;;  %v815_v60 = vcombine.low %v807_v61, %v814_v57  ;;  %v2874_v14 = vcombine.high %v2810_v63, %v2810_v63  ;;  %v2044_v61 = vpop.permute.xlu0 %2043 }
 0x1ec   :  { %v1022_v33 = vrot.slane %v5542_v59, %v5291_v40  ;;  %v5600_v0 = vcombine.low %v2125_v25, %v5545_v54  ;;  %v2929_v43 = vcombine.high %v2927_v31, %v2927_v31  ;;  %v5603_v15 = vrot.slane %v2927_v31, %v5291_v40  ;;  %v3191_v25 = vld [vmem:[%s6521_s4 + $0x70] sm:$0xff] }
 0x1ed   :  { %v3232_v39 = vcombine.low %v5551_v34, %v5559_v4  ;;  %v3233_v23 = vcombine.low %v5568_v24, %v5571_v26  ;;  %v2246_v8 = vcombine.low %v5575_v32, %v5514_v12  ;;  %v2253_v36 = vrot.slane %v5577_v16, %v5323_v37  ;;  %4813 = vmatmul.mubr.msk.f32.vlgmr.msra.gmra.mxu1 %vm1085_vm15, %v815_v60  ;;  %v2792_v60 = vpop.permute.xlu1 %2791  ;;  %v3181_v16 = vld [vmem:[%s6521_s4 + $0x20] sm:$0xff] }
 0x1ee   :  { %v5618_v38 = vrot.slane %v2928_v9, %v5291_v40  ;;  %4870 = vmatpush3.msra.mxu1 %v3192_v35  ;;  %v2889_v44 = vcombine.high %v2881_v53, %v2881_v53  ;;  %v840_v18 = vrot.slane %v5419_v22, %v5291_v40  ;;  %v847_v52 = vrot.slane %v5439_v41, %v5291_v40 }
 0x1ef   :  { %v2958_v29 = vcombine.high %v5592_v27, %v5592_v27  ;;  %4871 = vmatprep.subr.mxu1 %v5020_v11  ;;  %v5628_v63 = vrot.slane %v2874_v14, %v5291_v40  ;;  %v6531_v22 = vrot.slane %v5400_v5, %v5291_v40  ;;  %v889_v41 = vrot.slane %v5392_v48, %v5291_v40 }
 0x1f0   :  { %v5642_v57 = vrot.slane %v2929_v43, %v5291_v40  ;;  %v2959_v9 = vcombine.high %v5603_v15, %v5603_v15  ;;  %4872 = vmatpush3.msra.mxu1 %v3191_v25  ;;  %v849_v35 = vcombine.low %v840_v18, %v847_v52  ;;  %v6532_v21 = vrot.slane %v5373_v47, %v5291_v40  ;;  %v3189_v43 = vld [vmem:[%s6521_s4 + $0x60] sm:$0xff] }
 0x1f1   :  { %v848_v31 = vcombine.low %v6531_v22, %v833_v55  ;;  %v6533_v5 = vrot.slane %v5371_v46, %v5291_v40  ;;  %4873 = vmatprep.subr.mxu1 %v5020_v11  ;;  %v5654_v48 = vrot.slane %v2881_v53, %v5291_v40  ;;  %v898_v14 = vcombine.low %v889_v41, %v5466_v42 }
 0x1f2   :  { %v946_v25 = vcombine.low %v5478_v49, %v5481_v56  ;;  %v947_v47 = vcombine.low %v5484_v17, %v5456_v1  ;;  %v2960_v46 = vcombine.high %v5618_v38, %v5618_v38  ;;  %v5667_v18 = vrot.slane %v2889_v44, %v5291_v40  ;;  %4874 = vmatpush3.msra.mxu1 %v3190_v30  ;;  %v3188_v17 = vld [vmem:[%s6521_s4 + $0x58] sm:$0xff] }
 0x1f3   :  { %v897_v55 = vcombine.low %v6533_v5, %v6532_v21  ;;  %v856_v53 = vrot.slane %v848_v31, %v5291_v40  ;;  %v863_v42 = vrot.slane %v849_v35, %v5291_v40  ;;  %4875 = vmatprep.subr.mxu1 %v5020_v11  ;;  %v912_v49 = vrot.slane %v898_v14, %v5291_v40  ;;  %v2046_v14 = vpop.permute.xlu0 %2045 }
 0x1f4   :  { %v954_v56 = vrot.slane %v946_v25, %v5291_v40  ;;  %v961_v1 = vrot.slane %v947_v47, %v5291_v40  ;;  %4876 = vmatpush3.msra.mxu1 %v3189_v43  ;;  %v2064_v30 = vsel %vm1085_vm15, %v5312_v58, %v2044_v61  ;;  %v995_v22 = vcombine.low %v5459_v6, %v5462_v7  ;;  %v2794_v58 = vpop.permute.xlu1 %2793 }
 0x1f5   :  { %v905_v52 = vrot.slane %v897_v55, %v5291_v40  ;;  %v864_v44 = vcombine.low %v856_v53, %v863_v42  ;;  %v6534_v31 = vrot.slane %v5501_v28, %v5291_v40  ;;  %4877 = vmatprep.subr.mxu1 %v5020_v11  ;;  %v2127_v5 = vcombine.high %v2064_v30, %v2064_v30  ;;  %v3187_v28 = vld [vmem:[%s6521_s4 + $0x50] sm:$0xff] }
 0x1f6   :  { %v962_v21 = vcombine.low %v954_v56, %v961_v1  ;;  %v2134_v55 = vrot.slane %v2064_v30, %v5323_v37  ;;  %v2812_v43 = vsel %vm2347_vm0, %v2064_v30, %v2792_v60  ;;  %4878 = vmatpush3.msra.mxu1 %v3188_v17  ;;  %v1003_v6 = vrot.slane %v995_v22, %v5291_v40 }
 0x1f7   :  { %v996_v41 = vcombine.low %v6534_v31, %v994_v3  ;;  %v913_v35 = vcombine.low %v905_v52, %v912_v49  ;;  %4815 = vmatprep.mubr.msk.f32.mxu1 %vm1085_vm15, %v864_v44  ;;  %v2903_v3 = vrot.slane %v5628_v63, %v5291_v40  ;;  %v3249_v61 = vcombine.low %v5654_v48, %v5667_v18  ;;  %v3185_v31 = vld [vmem:[%s6521_s4 + $0x40] sm:$0xff] }
 0x1f8   :  { %v4678_v25 = vcombine.high %v5654_v48, %v5667_v18  ;;  %v2962_v60 = vcombine.high %v2812_v43, %v2812_v43  ;;  %v2969_v47 = vrot.slane %v2812_v43, %v5291_v40  ;;  %4879 = vmatprep.subr.mxu1 %v5020_v11  ;;  %v2065_v42 = vsel %vm1085_vm15, %v5377_v50, %v2046_v14  ;;  %v3186_v18 = vld [vmem:[%s6521_s4 + $0x48] sm:$0xff] }
 0x1f9   :  { %v1010_v7 = vrot.slane %v996_v41, %v5291_v40  ;;  %4816 = vmatmul.mubr.msk.f32.gmra.mxu1 %vm1085_vm15, %v913_v35  ;;  %v2126_v63 = vcombine.high %v5545_v54, %v5545_v54  ;;  %v2141_v52 = vrot.slane %v2127_v5, %v5323_v37  ;;  %v2142_v49 = vcombine.high %v2134_v55, %v2134_v55 }
 0x1fa   :  { %4818 = vmatprep.mubr.msk.f32.mxu1 %vm1085_vm15, %v962_v21  ;;  %4880 = vmatpush3.msra.mxu1 %v3187_v28  ;;  %v2143_v48 = vcombine.high %v2065_v42, %v2065_v42  ;;  %v2977_v56 = vcombine.high %v2969_v47, %v2969_v47  ;;  %v2984_v1 = vrot.slane %v2969_v47, %v5291_v40 }
 0x1fb   :  { %v1011_v53 = vcombine.low %v1003_v6, %v1010_v7  ;;  %4881 = vmatprep.subr.mxu1 %v5020_v11  ;;  %v2150_v17 = vrot.slane %v2065_v42, %v5323_v37  ;;  %v2813_v50 = vsel %vm2347_vm0, %v2065_v42, %v2794_v58  ;;  %v5717_v44 = vcombine.low %v2126_v63, %v2134_v55  ;;  %v2050_v55 = vpop.permute.xlu1 %2049 }
 0x1fc   :  { %v2157_v54 = vrot.slane %v2143_v48, %v5323_v37  ;;  %v3001_v30 = vcombine.high %v2813_v50, %v2813_v50  ;;  %v3008_v22 = vrot.slane %v2813_v50, %v5291_v40  ;;  %v2961_v41 = vcombine.high %v5642_v57, %v5642_v57  ;;  %4882 = vmatpush3.msra.mxu1 %v3186_v18  ;;  %v3182_v48 = vld [vmem:[%s6521_s4 + $0x28] sm:$0xff] }
 0x1fd   :  { %4819 = vmatmul.mubr.msk.f32.gmra.mxu1 %vm1085_vm15, %v1011_v53  ;;  %v5731_v35 = vcombine.low %v5618_v38, %v2958_v29  ;;  %v2976_v21 = vrot.slane %v2962_v60, %v5291_v40  ;;  %v2998_v5 = vrot.slane %v2977_v56, %v5291_v40  ;;  %v5736_v14 = vcombine.low %v2960_v46, %v5603_v15  ;;  %v3184_v38 = vld [vmem:[%s6521_s4 + $0x38] sm:$0xff] }
 0x1fe   :  { %v5742_v43 = vcombine.low %v5642_v57, %v2959_v9  ;;  %v2999_v58 = vcombine.high %v2984_v1, %v2984_v1  ;;  %v2158_v6 = vcombine.high %v2150_v17, %v2150_v17  ;;  %4883 = vmatprep.subr.mxu1 %v5020_v11  ;;  %v5749_v29 = vcombine.low %v2903_v3, %v5592_v27  ;;  %v2048_v57 = vpop.permute.xlu0 %2047  ;;  %v3183_v27 = vld [vmem:[%s6521_s4 + $0x30] sm:$0xff] }
 0x1ff   :  { %v5752_v46 = vrot.slane %v3249_v61, %v5291_v40  ;;  %v2159_v7 = vcombine.high %v2157_v54, %v2157_v54  ;;  %v3015_v15 = vrot.slane %v3001_v30, %v5291_v40  ;;  %4884 = vmatpush3.msra.mxu1 %v3185_v31  ;;  %v5756_v9 = vrot.slane %v4678_v25, %v5291_v40 }
 0x200   :  { %v2277_v28 = vrot.slane %v5717_v44, %v5323_v37  ;;  %v5760_v60 = vcombine.low %v2142_v49, %v2141_v52  ;;  %v3016_v47 = vcombine.high %v3008_v22, %v3008_v22  ;;  %4885 = vmatprep.subr.mxu1 %v5020_v11  ;;  %v2991_v3 = vrot.slane %v2976_v21, %v5291_v40 }
 0x201   :  { %v3000_v61 = vcombine.high %v2998_v5, %v2998_v5  ;;  %v5767_v53 = vcombine.low %v2961_v41, %v2984_v1  ;;  %v5770_v25 = vrot.slane %v3008_v22, %v5291_v40  ;;  %4886 = vmatpush3.msra.mxu1 %v3184_v38  ;;  %v5772_v42 = vcombine.low %v2998_v5, %v2999_v58 }
 0x202   :  { %v5774_v63 = vcombine.low %v2150_v17, %v2158_v6  ;;  %v2067_v52 = vsel %vm1085_vm15, %v5429_v51, %v2050_v55  ;;  %v1029_v49 = vrot.slane %v5584_v10, %v5291_v40  ;;  %4887 = vmatprep.subr.mxu1 %v5020_v11  ;;  %v5784_v18 = vcombine.low %v2157_v54, %v2159_v7  ;;  %v2798_v17 = vpop.permute.xlu1 %2797  ;;  %v2796_v59 = vpop.permute.xlu0 %2795 }
 0x203   :  { %v3017_v56 = vcombine.high %v3015_v15, %v3015_v15  ;;  %v1036_v1 = vrot.slane %v5589_v13, %v5291_v40  ;;  %v2260_v51 = vrot.slane %v2246_v8, %v5323_v37  ;;  %4888 = vmatpush3.msra.mxu1 %v3183_v27  ;;  %v5793_v10 = vrot.slane %v3015_v15, %v5291_v40 }
 0x204   :  { %v5796_v50 = vrot.slane %v3016_v47, %v5291_v40  ;;  %v1044_v44 = vcombine.low %v1022_v33, %v1029_v49  ;;  %v1069_v13 = vrot.slane %v5488_v2, %v5291_v40  ;;  %4889 = vmatprep.subr.mxu1 %v5020_v11  ;;  %v5804_v54 = vcombine.low %v3000_v61, %v2991_v3  ;;  %v3180_v61 = vld [vmem:[%s6521_s4 + $0x18] sm:$0xff] }
 0x205   :  { %v6535_v12 = vrot.slane %v5468_v45, %v5291_v40  ;;  %v2261_v8 = vcombine.low %v2253_v36, %v2260_v51  ;;  %v1076_v30 = vrot.slane %v5490_v62, %v5291_v40  ;;  %4890 = vmatpush3.msra.mxu1 %v3182_v48  ;;  %v2066_v2 = vsel %vm1085_vm15, %v5346_v19, %v2048_v57 }
 0x206   :  { %v1052_v33 = vrot.slane %v1044_v44, %v5291_v40  ;;  %v2815_v22 = vsel %vm2347_vm0, %v2067_v52, %v2798_v17  ;;  %v2270_v45 = vrot.slane %v5600_v0, %v5323_v37  ;;  %4891 = vmatprep.subr.mxu1 %v5020_v11  ;;  %v2160_v31 = vcombine.high %v2066_v2, %v2066_v2  ;;  %v2052_v44 = vpop.permute.xlu0 %2051 }
 0x207   :  { %v1045_v32 = vcombine.low %v1036_v1, %v6535_v12  ;;  %4852 = vmatmul.mubr.msk.f32.gmra.mxu0 %vm2347_vm0, %v2261_v8  ;;  %v1077_v36 = vcombine.low %v1069_v13, %v1076_v30  ;;  %v2167_v41 = vrot.slane %v2066_v2, %v5323_v37  ;;  %v3089_v19 = vcombine.high %v2815_v22, %v2815_v22  ;;  %v3179_v13 = vld [vmem:[%s6521_s4 + $0x10] sm:$0xff] }
 0x208   :  { %v3096_v21 = vrot.slane %v2815_v22, %v5291_v40  ;;  %4854 = vmatprep.mubr.msk.f32.mxu0 %vm5024_vm13, %v5020_v11  ;;  %v2278_v0 = vcombine.low %v2270_v45, %v2277_v28  ;;  %v2814_v5 = vsel %vm2347_vm0, %v2066_v2, %v2796_v59  ;;  %v2176_v55 = vcombine.high %v2067_v52, %v2067_v52  ;;  %v3178_v45 = vld [vmem:[%s6521_s4 + $0x8] sm:$0xff] }
 0x209   :  { %v1059_v62 = vrot.slane %v1045_v32, %v5291_v40  ;;  %v5832_v58 = vrot.slane %v2067_v52, %v5323_v37  ;;  %v2175_v38 = vcombine.high %v2167_v41, %v2167_v41  ;;  %4892 = vmatpush3.msra.mxu1 %v3181_v16  ;;  %v5835_v7 = vrot.slane %v3017_v56, %v5291_v40 }
 0x20a   :  { %v1084_v15 = vrot.slane %v1077_v36, %v5291_v40  ;;  %v3103_v57 = vrot.slane %v3089_v19, %v5291_v40  ;;  %v3050_v47 = vcombine.high %v2814_v5, %v2814_v5  ;;  %4893 = vmatprep.subr.mxu1 %v5020_v11  ;;  %v2294_v28 = vrot.slane %v5774_v63, %v5323_v37  ;;  %v2800_v19 = vpop.permute.xlu1 %2799 }
 0x20b   :  { %v1060_v6 = vcombine.low %v1052_v33, %v1059_v62  ;;  %v5844_v27 = vrot.slane %v2160_v31, %v5323_v37  ;;  %4855 = vmatmul.mubr.msk.f32.gmra.mxu0 %vm2347_vm0, %v2278_v0  ;;  %v3057_v3 = vrot.slane %v2814_v5, %v5291_v40  ;;  %v3348_v52 = vcombine.low %v5770_v25, %v5796_v50 }
 0x20c   :  { %v4679_v49 = vcombine.high %v5770_v25, %v5796_v50  ;;  %v2297_v63 = vcombine.low %v2167_v41, %v2175_v38  ;;  %v3104_v48 = vcombine.high %v3096_v21, %v3096_v21  ;;  %v2190_v56 = vrot.slane %v2176_v55, %v5323_v37  ;;  %4857 = vmatprep.mubr.msk.f32.mxu0 %vm5024_vm13, %v5020_v11 }
 0x20d   :  { %4821 = vmatprep.mubr.msk.f32.mxu1 %vm1085_vm15, %v1060_v6  ;;  %v3105_v1 = vcombine.high %v3103_v57, %v3103_v57  ;;  %v3064_v51 = vrot.slane %v3050_v47, %v5291_v40  ;;  %v3065_v17 = vcombine.high %v3057_v3, %v3057_v3  ;;  %v3350_v12 = vcombine.low %v5793_v10, %v5835_v7  ;;  %v3177_v47 = vld [vmem:[%s6521_s4] sm:$0xff] }
 0x20e   :  { %4822 = vmatmul.mubr.msk.f32.gmra.mxu1 %vm1085_vm15, %v1084_v15  ;;  %v4680_v32 = vcombine.high %v5793_v10, %v5835_v7  ;;  %v2191_v8 = vcombine.high %v5832_v58, %v5832_v58  ;;  %v5870_v30 = vrot.slane %v3096_v21, %v5291_v40  ;;  %v2313_v59 = vcombine.low %v5844_v27, %v5832_v58 }
 0x20f   :  { %4894 = vmatpush3.msra.mxu1 %v3180_v61  ;;  %v5875_v33 = vrot.slane %v3103_v57, %v5291_v40  ;;  %v5878_v2 = vrot.slane %v3065_v17, %v5291_v40  ;;  %v2287_v22 = vrot.slane %v5760_v60, %v5323_v37  ;;  %v2311_v16 = vrot.slane %v2297_v63, %v5323_v37 }
 0x210   :  { %4895 = vmatprep.subr.mxu1 %v5020_v11  ;;  %v5888_v62 = vrot.slane %v3104_v48, %v5291_v40  ;;  %v5891_v36 = vrot.slane %v3057_v3, %v5291_v40  ;;  %v2068_v31 = vsel %vm1085_vm15, %v5415_v20, %v2052_v44  ;;  %v5896_v60 = vrot.slane %v3105_v1, %v5291_v40 }
 0x211   :  { %4896 = vmatpush3.msra.mxu1 %v3179_v13  ;;  %v3079_v41 = vrot.slane %v3064_v51, %v5291_v40  ;;  %v2295_v21 = vcombine.low %v2287_v22, %v2294_v28  ;;  %v2192_v0 = vcombine.high %v2190_v56, %v2190_v56  ;;  %v2193_v5 = vcombine.high %v2068_v31, %v2068_v31 }
 0x212   :  { %4897 = vmatprep.subr.mxu1 %v5020_v11  ;;  %v2200_v55 = vrot.slane %v2068_v31, %v5323_v37  ;;  %v5902_v58 = vsel %vm2347_vm0, %v2068_v31, %v2800_v19  ;;  %v2304_v20 = vrot.slane %v5784_v18, %v5323_v37  ;;  %v2314_v6 = vcombine.low %v2191_v8, %v2190_v56 }
 0x213   :  { %4898 = vmatpush3.msra.mxu1 %v3178_v45  ;;  %v3134_v38 = vcombine.high %v5870_v30, %v5870_v30  ;;  %v3397_v15 = vcombine.low %v5891_v36, %v5878_v2  ;;  %4858 = vmatmul.mubr.msk.f32.gmra.mxu0 %vm2347_vm0, %v2295_v21  ;;  %v3145_v57 = vrot.slane %v5902_v58, %v5291_v40 }
 0x214   :  { %v2207_v28 = vrot.slane %v2193_v5, %v5323_v37  ;;  %v2208_v18 = vcombine.high %v2200_v55, %v2200_v55  ;;  %v2330_v27 = vcombine.low %v2192_v0, %v2200_v55  ;;  %4860 = vmatprep.mubr.msk.f32.mxu0 %vm5024_vm13, %v5020_v11  ;;  %v2312_v3 = vcombine.low %v2304_v20, %v2311_v16 }
 0x215   :  { %v3135_v61 = vcombine.high %v5875_v33, %v5875_v33  ;;  %v3136_v63 = vcombine.high %v5888_v62, %v5888_v62  ;;  %v3137_v48 = vcombine.high %v5896_v60, %v5896_v60  ;;  %4899 = vmatprep.subr.mxu1 %v5020_v11  ;;  %4901 = vmatprep.mubr.msk.f32.mxu1 %vm5024_vm13, %v5020_v11 }
 0x216   :  { %v4681_v56 = vcombine.high %v5891_v36, %v5878_v2  ;;  %v3399_v1 = vcombine.low %v3079_v41, %v5870_v30  ;;  %v2331_v51 = vcombine.low %v2208_v18, %v2207_v28  ;;  %4900 = vmatpush3.msra.mxu1 %v3177_v47  ;;  %v2321_v17 = vrot.slane %v2313_v59, %v5323_v37 }
 0x217   :  { %v5933_v44 = vrot.slane %v3397_v15, %v5291_v40  ;;  %v3153_v13 = vcombine.high %v3145_v57, %v3145_v57  ;;  %v5936_v8 = vrot.slane %v3145_v57, %v5291_v40  ;;  %4861 = vmatmul.mubr.msk.f32.gmra.mxu0 %vm2347_vm0, %v2312_v3  ;;  %v2328_v22 = vrot.slane %v2314_v6, %v5323_v37 }
 0x218   :  { %v2338_v45 = vrot.slane %v2330_v27, %v5323_v37  ;;  %4863 = vmatprep.mubr.msk.f32.mxu0 %vm5024_vm13, %v5020_v11  ;;  %v3240_v59 = vrot.slane %v3232_v39, %v5291_v40  ;;  %v3247_v2 = vrot.slane %v3233_v23, %v5291_v40  ;;  %v2345_v16 = vrot.slane %v2331_v51, %v5323_v37 }
 0x219   :  { %v2329_v36 = vcombine.low %v2321_v17, %v2328_v22  ;;  %v3273_v31 = vrot.slane %v5749_v29, %v5291_v40  ;;  %v3280_v41 = vrot.slane %v5731_v35, %v5291_v40  ;;  %v3281_v19 = vcombine.low %v5752_v46, %v5756_v9 }
 0x21a   :  { %v3248_v21 = vcombine.low %v3240_v59, %v3247_v2  ;;  %v2346_v34 = vcombine.low %v2338_v45, %v2345_v16  ;;  %v3308_v4 = vrot.slane %v5736_v14, %v5291_v40  ;;  %v3315_v24 = vrot.slane %v5742_v43, %v5291_v40 }
 0x21b   :  { %4864 = vmatmul.mubr.msk.f32.gmra.mxu0 %vm2347_vm0, %v2329_v36  ;;  %v3282_v26 = vcombine.low %v3273_v31, %v3280_v41  ;;  %v3289_v39 = vrot.slane %v3281_v19, %v5291_v40  ;;  %v3322_v23 = vrot.slane %v5767_v53, %v5291_v40  ;;  %v3329_v35 = vrot.slane %v5772_v42, %v5291_v40  ;;  %v6039_v36 = vld [vmem:[%s6523_s6] ss:$0 sm:$0xff] }
 0x21c   :  { %v3138_v29 = vcombine.high %v5902_v58, %v5902_v58  ;;  %4902 = vmatmul.mubr.f32.vlgmr.msra.gmra.mxu1 %v3248_v21  ;;  %4866 = vmatprep.mubr.msk.f32.mxu0 %vm5024_vm13, %v5020_v11  ;;  %v3330_v14 = vcombine.low %v3308_v4, %v3315_v24  ;;  %v3364_v43 = vrot.slane %v3348_v52, %v5291_v40 }
 0x21d   :  { %4904 = vmatprep.mubr.msk.f32.mxu1 %vm5024_vm13, %v5020_v11  ;;  %v3296_v46 = vrot.slane %v3282_v26, %v5291_v40  ;;  %v3331_v9 = vcombine.low %v3322_v23, %v3329_v35  ;;  %v3371_v53 = vrot.slane %v4679_v49, %v5291_v40  ;;  %v3378_v42 = vrot.slane %v3350_v12, %v5291_v40  ;;  %v6047_v23 = vld [vmem:[%s6522_s5] ss:$0 sm:$0xff] }
 0x21e   :  { %v3420_v0 = vrot.slane %v4681_v56, %v5291_v40  ;;  %v3174_v52 = vrot.slane %v3153_v13, %v5291_v40  ;;  %v3448_v5 = vcombine.low %v3137_v48, %v5936_v8  ;;  %v3357_v55 = vrot.slane %v5804_v54, %v5291_v40 }
 0x21f   :  { %4867 = vmatmul.mubr.msk.f32.gmra.mxu0 %vm2347_vm0, %v2346_v34  ;;  %v3297_v58 = vcombine.low %v3289_v39, %v3296_v46  ;;  %v3345_v25 = vrot.slane %v3331_v9, %v5291_v40  ;;  %v3380_v50 = vcombine.low %v3371_v53, %v3378_v42  ;;  %v3427_v49 = vrot.slane %v3399_v1, %v5291_v40 }
 0x220   :  { %v3152_v20 = vrot.slane %v3138_v29, %v5291_v40  ;;  %v3406_v12 = vrot.slane %v4680_v32, %v5291_v40  ;;  %4946 = vmatprep.mubr.msk.f32.mxu0 %vm5024_vm13, %v5020_v11  ;;  %v3446_v54 = vcombine.low %v3136_v63, %v5875_v33  ;;  %v3447_v6 = vcombine.low %v5896_v60, %v3135_v61 }
 0x221   :  { %4905 = vmatmul.mubr.f32.gmra.mxu1 %v3297_v58  ;;  %v3338_v15 = vrot.slane %v3330_v14, %v5291_v40  ;;  %v3379_v57 = vcombine.low %v3357_v55, %v3364_v43  ;;  %v3445_v47 = vcombine.low %v5888_v62, %v3134_v38  ;;  %v3176_v28 = vcombine.high %v3174_v52, %v3174_v52 }
 0x222   :  { %4907 = vmatprep.mubr.msk.f32.mxu1 %vm5024_vm13, %v5020_v11  ;;  %v3428_v10 = vcombine.low %v3406_v12, %v5933_v44  ;;  %v3394_v32 = vrot.slane %v3380_v50, %v5291_v40  ;;  %v3429_v33 = vcombine.low %v3420_v0, %v3427_v49  ;;  %v3476_v60 = vrot.slane %v3448_v5, %v5291_v40 }
 0x223   :  { %v3346_v7 = vcombine.low %v3338_v15, %v3345_v25  ;;  %v3167_v18 = vrot.slane %v3152_v20, %v5291_v40  ;;  %v3175_v27 = vcombine.high %v5936_v8, %v5936_v8  ;;  %v3387_v30 = vrot.slane %v3379_v57, %v5291_v40 }
 0x224   :  { %v3462_v62 = vrot.slane %v3446_v54, %v5291_v40  ;;  %v3469_v38 = vrot.slane %v3447_v6, %v5291_v40  ;;  %v3436_v3 = vrot.slane %v3428_v10, %v5291_v40  ;;  %v3455_v61 = vrot.slane %v3445_v47, %v5291_v40 }
 0x225   :  { %4908 = vmatmul.mubr.f32.gmra.mxu1 %v3346_v7  ;;  %v3395_v63 = vcombine.low %v3387_v30, %v3394_v32  ;;  %v3443_v48 = vrot.slane %v3429_v33, %v5291_v40  ;;  %v3495_v1 = vcombine.low %v3176_v28, %v3167_v18  ;;  %v3494_v17 = vcombine.low %v3174_v52, %v3175_v27 }
 0x226   :  { %4910 = vmatprep.mubr.msk.f32.mxu1 %vm5024_vm13, %v5020_v11  ;;  %v3478_v56 = vcombine.low %v3469_v38, %v3476_v60  ;;  %v3477_v51 = vcombine.low %v3455_v61, %v3462_v62 }
 0x227   :  { %v3444_v44 = vcombine.low %v3436_v3, %v3443_v48  ;;  %v3509_v8 = vrot.slane %v3495_v1, %v5291_v40  ;;  %v3502_v45 = vrot.slane %v3494_v17, %v5291_v40 }
 0x228   :  { %v3492_v13 = vrot.slane %v3478_v56, %v5291_v40  ;;  %v3485_v22 = vrot.slane %v3477_v51, %v5291_v40 }
 0x229   :  { %4911 = vmatmul.mubr.f32.gmra.mxu1 %v3395_v63  ;;  %v3510_v2 = vcombine.low %v3502_v45, %v3509_v8 }
 0x22a   :  { %4913 = vmatprep.mubr.msk.f32.mxu1 %vm5024_vm13, %v5020_v11  ;;  %v3493_v59 = vcombine.low %v3485_v22, %v3492_v13 }
 0x22b   :  { %v3517_v16 = vrot.slane %v3510_v2, %v5291_v40 }
 0x22d   :  { %4914 = vmatmul.mubr.f32.gmra.mxu1 %v3444_v44 }
 0x22e   :  { %4916 = vmatprep.mubr.msk.f32.mxu1 %vm5024_vm13, %v5020_v11 }
 0x231   :  { %4917 = vmatmul.mubr.f32.gmra.mxu1 %v3493_v59 }
 0x232   :  { %4919 = vmatprep.mubr.msk.f32.mxu1 %vm5024_vm13, %v5020_v11 }
 0x235   :  { %4920 = vmatmul.mubr.f32.gmra.mxu1 %v3517_v16 }
 0x2a1   :  { %v2428_v31 = vpop.f32.mrf.mxu0 }
 0x2a2   :  { %v2429_v41 = vadd.f32 %v6039_v36, %v2428_v31 }
 0x2a3   :  { %v4850_v19 = vpop.f32.mrf.mxu0 }
 0x2a4   :  { %v2462_v21 = vmax.f32 %v2429_v41, 0.0 }
 0x2a6   :  { %v2476_v34 = vcombine.high %v2462_v21, %v2462_v21  ;;  %v2483_v4 = vrot.slane %v2462_v21, %v5323_v37 }
 0x2a8   :  { %v2490_v24 = vrot.slane %v2476_v34, %v5323_v37  ;;  %v2491_v26 = vcombine.high %v2483_v4, %v2483_v4 }
 0x2aa   :  { %v2492_v39 = vcombine.high %v2490_v24, %v2490_v24  ;;  %v2595_v14 = vcombine.low %v2483_v4, %v2491_v26 }
 0x2ac   :  { %v2596_v35 = vcombine.low %v2490_v24, %v2492_v39  ;;  %v2603_v0 = vrot.slane %v2595_v14, %v5323_v37 }
 0x2ad   :  { %v4814_v29 = vpop.f32.mrf.mxu1 }
 0x2ae   :  { %v1174_v43 = vadd.f32 %v4814_v29, %v6047_v23  ;;  %v2610_v9 = vrot.slane %v2596_v35, %v5323_v37 }
 0x2af   :  { %v1168_v46 = vpop.f32.mrf.mxu1 }
 0x2b0   :  { %v1208_v53 = vmax.f32 %v1174_v43, 0.0  ;;  %v1169_v42 = vadd.f32 %v6047_v23, %v1168_v46  ;;  %v2611_v58 = vcombine.low %v2603_v0, %v2610_v9 }
 0x2b2   :  { %v1272_v52 = vcombine.high %v1208_v53, %v1208_v53  ;;  %v1279_v5 = vrot.slane %v1208_v53, %v5291_v40  ;;  %v1207_v55 = vmax.f32 %v1169_v42, 0.0  ;;  %v6061_v10 = vsel %vm1986_vm1, %v2611_v58, -inf }
 0x2b4   :  { %v1286_v25 = vrot.slane %v1272_v52, %v5291_v40  ;;  %v1287_v50 = vcombine.high %v1279_v5, %v1279_v5  ;;  %v1223_v49 = vcombine.high %v1207_v55, %v1207_v55  ;;  %v1295_v20 = vrot.slane %v1279_v5, %v5291_v40 }
 0x2b5   :  { %v1230_v12 = vrot.slane %v1207_v55, %v5291_v40 }
 0x2b6   :  { %v1288_v54 = vcombine.high %v1286_v25, %v1286_v25  ;;  %v1302_v6 = vrot.slane %v1286_v25, %v5291_v40  ;;  %v1309_v15 = vrot.slane %v1287_v50, %v5291_v40  ;;  %v1237_v57 = vrot.slane %v1223_v49, %v5291_v40 }
 0x2b7   :  { %v1238_v47 = vcombine.high %v1230_v12, %v1230_v12  ;;  %v1246_v27 = vrot.slane %v1230_v12, %v5291_v40 }
 0x2b8   :  { %v6064_v7 = vrot.slane %v1288_v54, %v5291_v40  ;;  %v1318_v32 = vcombine.high %v1302_v6, %v1302_v6  ;;  %v1639_v33 = vcombine.low %v1295_v20, %v1309_v15  ;;  %v4662_v60 = vcombine.high %v1295_v20, %v1309_v15 }
 0x2b9   :  { %v4817_v28 = vpop.f32.mrf.mxu1  ;;  %v1239_v18 = vcombine.high %v1237_v57, %v1237_v57  ;;  %v1260_v30 = vrot.slane %v1238_v47, %v5291_v40  ;;  %v1253_v48 = vrot.slane %v1237_v57, %v5291_v40 }
 0x2ba   :  { %v1184_v62 = vadd.f32 %v4817_v28, %v6047_v23  ;;  %v1641_v3 = vcombine.low %v1302_v6, %v6064_v7  ;;  %v1648_v61 = vrot.slane %v1639_v33, %v5291_v40  ;;  %v1655_v63 = vrot.slane %v4662_v60, %v5291_v40 }
 0x2bb   :  { %v1178_v38 = vpop.f32.mrf.mxu1  ;;  %v1267_v56 = vrot.slane %v1239_v18, %v5291_v40  ;;  %v1590_v1 = vcombine.low %v1246_v27, %v1260_v30  ;;  %v4660_v51 = vcombine.high %v1246_v27, %v1260_v30  ;;  %v1669_v13 = vrot.slane %v1318_v32, %v5291_v40 }
 0x2bc   :  { %v1210_v17 = vmax.f32 %v1184_v62, 0.0  ;;  %v1662_v44 = vrot.slane %v1641_v3, %v5291_v40  ;;  %v1670_v8 = vcombine.low %v1648_v61, %v1655_v63  ;;  %v1179_v22 = vadd.f32 %v6047_v23, %v1178_v38 }
 0x2bd   :  { %v1592_v45 = vcombine.low %v1253_v48, %v1267_v56  ;;  %v4661_v59 = vcombine.high %v1253_v48, %v1267_v56  ;;  %v1600_v2 = vrot.slane %v1590_v1, %v5291_v40  ;;  %v1607_v16 = vrot.slane %v4660_v51, %v5291_v40  ;;  %v4820_v49 = vpop.f32.mrf.mxu1 }
 0x2be   :  { %v1671_v31 = vcombine.low %v1662_v44, %v1669_v13  ;;  %v1678_v41 = vrot.slane %v1670_v8, %v5291_v40  ;;  %v1370_v19 = vcombine.high %v1210_v17, %v1210_v17  ;;  %v1377_v21 = vrot.slane %v1210_v17, %v5291_v40 }
 0x2bf   :  { %v1614_v34 = vrot.slane %v1592_v45, %v5291_v40  ;;  %v1621_v4 = vrot.slane %v4661_v59, %v5291_v40  ;;  %v1622_v24 = vcombine.low %v1600_v2, %v1607_v16  ;;  %v1209_v26 = vmax.f32 %v1179_v22, 0.0  ;;  %v1188_v3 = vpop.f32.mrf.mxu1 }
 0x2c0   :  { %v1685_v39 = vrot.slane %v1671_v31, %v5291_v40  ;;  %v1384_v35 = vrot.slane %v1370_v19, %v5291_v40  ;;  %v1385_v29 = vcombine.high %v1377_v21, %v1377_v21  ;;  %v1393_v14 = vrot.slane %v1377_v21, %v5291_v40 }
 0x2c1   :  { %v1623_v43 = vcombine.low %v1614_v34, %v1621_v4  ;;  %v1320_v46 = vcombine.high %v6064_v7, %v6064_v7  ;;  %v1321_v9 = vcombine.high %v1209_v26, %v1209_v26  ;;  %v1328_v53 = vrot.slane %v1209_v26, %v5291_v40 }
 0x2c2   :  { %v1686_v42 = vcombine.low %v1678_v41, %v1685_v39  ;;  %v1630_v0 = vrot.slane %v1622_v24, %v5291_v40  ;;  %v1386_v52 = vcombine.high %v1384_v35, %v1384_v35  ;;  %v1407_v5 = vrot.slane %v1385_v29, %v5291_v40 }
 0x2c3   :  { %v1637_v55 = vrot.slane %v1623_v43, %v5291_v40  ;;  %v1415_v58 = vcombine.high %v1393_v14, %v1393_v14  ;;  %v1335_v25 = vrot.slane %v1321_v9, %v5291_v40  ;;  %v1336_v50 = vcombine.high %v1328_v53, %v1328_v53 }
 0x2c4   :  { %v1400_v20 = vrot.slane %v1384_v35, %v5291_v40  ;;  %v1414_v12 = vrot.slane %v1386_v52, %v5291_v40  ;;  %v1417_v54 = vcombine.high %v1407_v5, %v1407_v5  ;;  %v1344_v6 = vrot.slane %v1328_v53, %v5291_v40 }
 0x2c5   :  { %v1638_v15 = vcombine.low %v1630_v0, %v1637_v55  ;;  %v1737_v57 = vcombine.low %v1407_v5, %v1415_v58  ;;  %v1337_v47 = vcombine.high %v1335_v25, %v1335_v25  ;;  %v1351_v28 = vrot.slane %v1335_v25, %v5291_v40 }
 0x2c6   :  { %v1989_v7 = vsel %vm1988_vm2, %v1686_v42, -inf  ;;  %v1738_v32 = vcombine.low %v1417_v54, %v1400_v20  ;;  %v1766_v33 = vrot.slane %v1414_v12, %v5291_v40  ;;  %v1358_v60 = vrot.slane %v1336_v50, %v5291_v40 }
 0x2c7   :  { %v2433_v18 = vpop.f32.mrf.mxu0  ;;  %v1987_v27 = vsel %vm1986_vm1, %v1638_v15, -inf  ;;  %v4663_v30 = vcombine.high %v1400_v20, %v1414_v12  ;;  %v1365_v62 = vrot.slane %v1337_v47, %v5291_v40  ;;  %v1366_v38 = vcombine.high %v1344_v6, %v1344_v6 }
 0x2c8   :  { %v6102_v61 = vmax.f32 %v1987_v27, %v1989_v7  ;;  %v1752_v63 = vrot.slane %v1737_v57, %v5291_v40  ;;  %v1759_v48 = vrot.slane %v1738_v32, %v5291_v40  ;;  %v1367_v56 = vcombine.high %v1351_v28, %v1351_v28 }
 0x2c9   :  { %v4853_v1 = vpop.f32.mrf.mxu0  ;;  %v1368_v51 = vcombine.high %v1358_v60, %v1358_v60  ;;  %v1369_v17 = vcombine.high %v1365_v62, %v1365_v62  ;;  %v1687_v44 = vcombine.low %v1320_v46, %v1344_v6  ;;  %v1688_v13 = vcombine.low %v1358_v60, %v1366_v38 }
 0x2ca   :  { %v1768_v8 = vcombine.low %v1759_v48, %v1766_v33  ;;  %v1690_v22 = vcombine.low %v1365_v62, %v1367_v56  ;;  %v1194_v45 = vadd.f32 %v4820_v49, %v6047_v23  ;;  %v1189_v59 = vadd.f32 %v6047_v23, %v1188_v3 }
 0x2cb   :  { %v6108_v2 = vpop.f32.mrf.mxu0  ;;  %v1689_v16 = vcombine.low %v1368_v51, %v1351_v28  ;;  %v1697_v31 = vrot.slane %v1687_v44, %v5291_v40  ;;  %v1704_v41 = vrot.slane %v1688_v13, %v5291_v40  ;;  %v1736_v19 = vcombine.low %v1369_v17, %v1393_v14 }
 0x2cc   :  { %v6113_v21 = vrot.slane %v4663_v30, %v5291_v40  ;;  %v1718_v34 = vrot.slane %v1690_v22, %v5291_v40  ;;  %v1212_v4 = vmax.f32 %v1194_v45, 0.0  ;;  %v1211_v24 = vmax.f32 %v1189_v59, 0.0 }
 0x2cd   :  { %v4856_v26 = vpop.f32.mrf.mxu0  ;;  %v1711_v39 = vrot.slane %v1689_v16, %v5291_v40  ;;  %v1719_v35 = vcombine.low %v1697_v31, %v1704_v41  ;;  %v1745_v29 = vrot.slane %v1736_v19, %v5291_v40  ;;  %v2434_v43 = vadd.f32 %v6039_v36, %v2433_v18 }
 0x2ce   :  { %v1468_v46 = vcombine.high %v1212_v4, %v1212_v4  ;;  %v1475_v9 = vrot.slane %v1212_v4, %v5291_v40  ;;  %v1419_v53 = vcombine.high %v1211_v24, %v1211_v24  ;;  %v1426_v14 = vrot.slane %v1211_v24, %v5291_v40  ;;  %v4823_v38 = vpop.f32.mrf.mxu1 }
 0x2cf   :  { %v1782_v42 = vrot.slane %v1768_v8, %v5291_v40  ;;  %v1720_v0 = vcombine.low %v1711_v39, %v1718_v34  ;;  %v1727_v52 = vrot.slane %v1719_v35, %v5291_v40  ;;  %v1767_v5 = vcombine.low %v1745_v29, %v1752_v63 }
 0x2d0   :  { %v1482_v55 = vrot.slane %v1468_v46, %v5291_v40  ;;  %v1483_v58 = vcombine.high %v1475_v9, %v1475_v9  ;;  %v1433_v25 = vrot.slane %v1419_v53, %v5291_v40  ;;  %v2463_v50 = vmax.f32 %v2434_v43, 0.0  ;;  %v1198_v4 = vpop.f32.mrf.mxu1 }
 0x2d1   :  { %v1734_v49 = vrot.slane %v1720_v0, %v5291_v40  ;;  %v1775_v20 = vrot.slane %v1767_v5, %v5291_v40  ;;  %v1491_v12 = vrot.slane %v1475_v9, %v5291_v40  ;;  %v1434_v54 = vcombine.high %v1426_v14, %v1426_v14 }
 0x2d2   :  { %v1484_v6 = vcombine.high %v1482_v55, %v1482_v55  ;;  %v1498_v15 = vrot.slane %v1482_v55, %v5291_v40  ;;  %v1505_v57 = vrot.slane %v1483_v58, %v5291_v40  ;;  %v1435_v47 = vcombine.high %v1433_v25, %v1433_v25 }
 0x2d3   :  { %v6130_v28 = vpop.f32.mrf.mxu0  ;;  %v1735_v7 = vcombine.low %v1727_v52, %v1734_v49  ;;  %v1783_v32 = vcombine.low %v1775_v20, %v1782_v42  ;;  %v1442_v33 = vrot.slane %v1426_v14, %v5291_v40  ;;  %v1456_v60 = vrot.slane %v1434_v54, %v5291_v40 }
 0x2d4   :  { %v6135_v18 = vrot.slane %v1484_v6, %v5291_v40  ;;  %v1834_v27 = vcombine.low %v1491_v12, %v1505_v57  ;;  %v4666_v30 = vcombine.high %v1491_v12, %v1505_v57  ;;  %v1449_v62 = vrot.slane %v1433_v25, %v5291_v40 }
 0x2d5   :  { %v4859_v3 = vpop.f32.mrf.mxu0  ;;  %v1997_v63 = vsel %vm1986_vm1, %v1735_v7, -inf  ;;  %v1998_v48 = vsel %vm1988_vm2, %v1783_v32, -inf  ;;  %v1514_v56 = vcombine.high %v1498_v15, %v1498_v15  ;;  %v1463_v1 = vrot.slane %v1435_v47, %v5291_v40 }
 0x2d6   :  { %v6141_v51 = vmax.f32 %v1997_v63, %v1998_v48  ;;  %v1849_v17 = vrot.slane %v1834_v27, %v5291_v40  ;;  %v1856_v44 = vrot.slane %v4666_v30, %v5291_v40  ;;  %v1863_v13 = vrot.slane %v1498_v15, %v5291_v40 }
 0x2d7   :  { %v6146_v8 = vpop.f32.mrf.mxu0  ;;  %v1785_v22 = vcombine.low %v1442_v33, %v1456_v60  ;;  %v4664_v45 = vcombine.high %v1442_v33, %v1456_v60  ;;  %v1787_v59 = vcombine.low %v1449_v62, %v1463_v1  ;;  %v4665_v16 = vcombine.high %v1449_v62, %v1463_v1 }
 0x2d8   :  { %v1865_v31 = vcombine.low %v1856_v44, %v1863_v13  ;;  %v2493_v41 = vcombine.high %v2463_v50, %v2463_v50  ;;  %v2500_v19 = vrot.slane %v2463_v50, %v5323_v37  ;;  %v1204_v34 = vadd.f32 %v4823_v38, %v6047_v23 }
 0x2d9   :  { %v4862_v24 = vpop.f32.mrf.mxu0  ;;  %v1801_v26 = vrot.slane %v1785_v22, %v5291_v40  ;;  %v1808_v39 = vrot.slane %v4664_v45, %v5291_v40  ;;  %v1815_v35 = vrot.slane %v1787_v59, %v5291_v40  ;;  %v1842_v29 = vrot.slane %v4665_v16, %v5291_v40 }
 0x2da   :  { %v6155_v43 = vcombine.low %v6135_v18, %v1514_v56  ;;  %v6158_v46 = vrot.slane %v2493_v41, %v5323_v37  ;;  %v2508_v9 = vcombine.high %v2500_v19, %v2500_v19  ;;  %v1214_v53 = vmax.f32 %v1204_v34, 0.0 }
 0x2db   :  { %v6160_v14 = vpop.f32.mrf.mxu0  ;;  %v1816_v42 = vcombine.low %v6113_v21, %v1801_v26  ;;  %v1817_v0 = vcombine.low %v1808_v39, %v1815_v35  ;;  %v1864_v52 = vcombine.low %v1842_v29, %v1849_v17  ;;  %v1199_v5 = vadd.f32 %v6047_v23, %v1198_v4 }
 0x2dc   :  { %v6164_v55 = vpop.f32.mrf.mxu1  ;;  %v1879_v58 = vrot.slane %v1865_v31, %v5291_v40  ;;  %v2612_v25 = vcombine.low %v2500_v19, %v2508_v9  ;;  %v2626_v50 = vrot.slane %v6158_v46, %v5323_v37  ;;  %v1572_v49 = vrot.slane %v1214_v53, %v5291_v40 }
 0x2dd   :  { %v4865_v20 = vpop.f32.mrf.mxu0  ;;  %v6171_v12 = vrot.slane %v1816_v42, %v5291_v40  ;;  %v6174_v21 = vrot.slane %v1817_v0, %v5291_v40  ;;  %v1872_v54 = vrot.slane %v1864_v52, %v5291_v40  ;;  %v1213_v23 = vmax.f32 %v1199_v5, 0.0 }
 0x2de   :  { %v4903_v6 = vpop.f32.mrf.mxu1  ;;  %v2619_v15 = vrot.slane %v2612_v25, %v5323_v37  ;;  %v1573_v57 = vcombine.high %v1572_v49, %v1572_v49  ;;  %v1580_v47 = vrot.slane %v1572_v49, %v5291_v40  ;;  %v1516_v7 = vcombine.high %v6135_v18, %v6135_v18 }
 0x2df   :  { %v6181_v32 = vpop.f32.mrf.mxu0  ;;  %v1832_v33 = vcombine.low %v6171_v12, %v6174_v21  ;;  %v6185_v60 = vcombine.low %v1872_v54, %v1879_v58  ;;  %v1517_v27 = vcombine.high %v1213_v23, %v1213_v23  ;;  %v1524_v30 = vrot.slane %v1213_v23, %v5291_v40 }
 0x2e0   :  { %v2627_v62 = vcombine.low %v2619_v15, %v2626_v50  ;;  %v1587_v38 = vrot.slane %v1573_v57, %v5291_v40  ;;  %v1588_v3 = vcombine.high %v1580_v47, %v1580_v47  ;;  %v2439_v63 = vadd.f32 %v6039_v36, %v6108_v2 }
 0x2e1   :  { %v6191_v48 = vpop.f32.mrf.mxu1  ;;  %v4868_v18 = vpop.f32.mrf.mxu0  ;;  %v1531_v56 = vrot.slane %v1517_v27, %v5291_v40  ;;  %v1532_v1 = vcombine.high %v1524_v30, %v1524_v30  ;;  %v1540_v17 = vrot.slane %v1524_v30, %v5291_v40  ;;  %v1891_v44 = vrot.slane %v6155_v43, %v5291_v40 }
 0x2e2   :  { %v2737_v13 = vsel %vm2736_vm3, %v2627_v62, -inf  ;;  %v1589_v22 = vcombine.high %v1587_v38, %v1587_v38  ;;  %v1932_v45 = vcombine.low %v1587_v38, %v1588_v3  ;;  %v2464_v59 = vmax.f32 %v2439_v63, 0.0 }
 0x2e3   :  { %v4906_v16 = vpop.f32.mrf.mxu1  ;;  %v2738_v31 = vmax.f32 %v6061_v10, %v2737_v13  ;;  %v1533_v2 = vcombine.high %v1531_v56, %v1531_v56  ;;  %v1547_v41 = vrot.slane %v1531_v56, %v5291_v40  ;;  %v1554_v19 = vrot.slane %v1532_v1, %v5291_v40 }
 0x2e4   :  { %v1953_v34 = vrot.slane %v1932_v45, %v5291_v40  ;;  %v1960_v4 = vrot.slane %v1589_v22, %v5291_v40  ;;  %v1562_v24 = vcombine.high %v1540_v17, %v1540_v17  ;;  %v1882_v26 = vcombine.low %v1516_v7, %v1540_v17 }
 0x2e5   :  { %v6203_v39 = vpop.f32.mrf.mxu1  ;;  %v2739_v35 = vrot.slane %v2738_v31, 4  ;;  %v1561_v29 = vrot.slane %v1533_v2, %v5291_v40  ;;  %v1563_v43 = vcombine.high %v1547_v41, %v1547_v41  ;;  %v1564_v9 = vcombine.high %v1554_v19, %v1554_v19 }
 0x2e6   :  { %v6206_v53 = vcombine.low %v1953_v34, %v1960_v4  ;;  %v1883_v10 = vcombine.low %v1554_v19, %v1562_v24  ;;  %v1898_v42 = vrot.slane %v1882_v26, %v5291_v40  ;;  %v2509_v0 = vcombine.high %v6158_v46, %v6158_v46 }
 0x2e7   :  { %v4909_v52 = vpop.f32.mrf.mxu1  ;;  %v6211_v5 = vmax.f32 %v2738_v31, %v2739_v35  ;;  %v1565_v58 = vcombine.high %v1561_v29, %v1561_v29  ;;  %v1884_v25 = vcombine.low %v1564_v9, %v1547_v41  ;;  %v1930_v50 = vcombine.low %v1561_v29, %v1563_v43 }
 0x2e8   :  { %v1976_v49 = vrot.slane %v6206_v53, %v5291_v40  ;;  %v1905_v20 = vrot.slane %v1883_v10, %v5291_v40  ;;  %v1913_v54 = vcombine.low %v1891_v44, %v1898_v42  ;;  %v2510_v23 = vcombine.high %v2464_v59, %v2464_v59 }
 0x2e9   :  { %v6216_v6 = vpop.f32.mrf.mxu1  ;;  %v1912_v15 = vrot.slane %v1884_v25, %v5291_v40  ;;  %v1931_v57 = vcombine.low %v1565_v58, %v1580_v47  ;;  %v1939_v46 = vrot.slane %v1930_v50, %v5291_v40  ;;  %v2517_v7 = vrot.slane %v2464_v59, %v5323_v37 }
 0x2ea   :  { %v1921_v27 = vrot.slane %v1913_v54, %v5291_v40  ;;  %v2524_v30 = vrot.slane %v2510_v23, %v5323_v37  ;;  %v2444_v62 = vadd.f32 %v6039_v36, %v6130_v28  ;;  %v2449_v38 = vadd.f32 %v6039_v36, %v6146_v8  ;;  %v6253_v54 = vld [vmem:[%s6524_s7] ss:$0 sm:$0xff]  ;;  %s5027_s7 = smov 8  }
 0x2eb   :  { %v4912_v3 = vpop.f32.mrf.mxu1  ;;  %v1914_v63 = vcombine.low %v1905_v20, %v1912_v15  ;;  %v1946_v18 = vrot.slane %v1931_v57, %v5291_v40  ;;  %v2525_v56 = vcombine.high %v2517_v7, %v2517_v7  ;;  %v2628_v47 = vcombine.low %v2509_v0, %v2517_v7 }
 0x2ec   :  { %v2465_v1 = vmax.f32 %v2444_v62, 0.0  ;;  %v2526_v17 = vcombine.high %v2524_v30, %v2524_v30  ;;  %v2466_v44 = vmax.f32 %v2449_v38, 0.0  ;;  %v2454_v13 = vadd.f32 %v6039_v36, %v6160_v14 }
 0x2ed   :  { %v6230_v22 = vpop.f32.mrf.mxu1  ;;  %v1928_v45 = vrot.slane %v1914_v63, %v5291_v40  ;;  %v6233_v28 = vcombine.low %v1939_v46, %v1946_v18  ;;  %v2629_v59 = vcombine.low %v2525_v56, %v2524_v30  ;;  %v2636_v8 = vrot.slane %v2628_v47, %v5323_v37 }
 0x2ee   :  { %v2527_v16 = vcombine.high %v2465_v1, %v2465_v1  ;;  %v2534_v31 = vrot.slane %v2465_v1, %v5323_v37  ;;  %v2544_v2 = vcombine.high %v2466_v44, %v2466_v44  ;;  %v2551_v41 = vrot.slane %v2466_v44, %v5323_v37 }
 0x2ef   :  { %v4915_v19 = vpop.f32.mrf.mxu1  ;;  %v6238_v34 = vcombine.low %v1921_v27, %v1928_v45  ;;  %v1969_v14 = vrot.slane %v6233_v28, %v5291_v40  ;;  %v2643_v4 = vrot.slane %v2629_v59, %v5323_v37  ;;  %v2467_v24 = vmax.f32 %v2454_v13, 0.0 }
 0x2f0   :  { %v2541_v26 = vrot.slane %v2527_v16, %v5323_v37  ;;  %v2542_v35 = vcombine.high %v2534_v31, %v2534_v31  ;;  %v2645_v29 = vcombine.low %v2526_v17, %v2534_v31  ;;  %v2558_v43 = vrot.slane %v2544_v2, %v5323_v37 }
 0x2f1   :  { %v6245_v9 = vpop.f32.mrf.mxu1  ;;  %v2644_v10 = vcombine.low %v2636_v8, %v2643_v4  ;;  %v2559_v42 = vcombine.high %v2551_v41, %v2551_v41  ;;  %v2561_v0 = vcombine.high %v2467_v24, %v2467_v24  ;;  %v2568_v52 = vrot.slane %v2467_v24, %v5323_v37 }
 0x2f2   :  { %v2543_v58 = vcombine.high %v2541_v26, %v2541_v26  ;;  %v2652_v25 = vrot.slane %v2645_v29, %v5323_v37  ;;  %v2659_v50 = vrot.slane %v2542_v35, %v5323_v37  ;;  %v2560_v20 = vcombine.high %v2558_v43, %v2558_v43 }
 0x2f3   :  { %v4918_v23 = vpop.f32.mrf.mxu1  ;;  %v2745_v15 = vsel %vm1986_vm1, %v2644_v10, -inf  ;;  %v2662_v57 = vcombine.low %v2551_v41, %v2559_v42  ;;  %v2575_v46 = vrot.slane %v2561_v0, %v5323_v37  ;;  %v2576_v7 = vcombine.high %v2568_v52, %v2568_v52 }
 0x2f4   :  { %v2660_v27 = vcombine.low %v2652_v25, %v2659_v50  ;;  %v2661_v30 = vcombine.low %v2541_v26, %v2543_v58  ;;  %v2678_v62 = vcombine.low %v2558_v43, %v2560_v20  ;;  %v2692_v38 = vrot.slane %v2568_v52, %v5323_v37 }
 0x2f5   :  { %v6258_v3 = vpop.f32.mrf.mxu1  ;;  %v2676_v63 = vrot.slane %v2662_v57, %v5323_v37  ;;  %v2694_v18 = vcombine.low %v2576_v7, %v2575_v46  ;;  %v3592_v56 = vadd.f32 %v6253_v54, %v6164_v55  ;;  %v2459_v47 = vadd.f32 %v6039_v36, %v6181_v32 }
 0x2f6   :  { %v2669_v1 = vrot.slane %v2661_v30, %v5323_v37  ;;  %v2746_v17 = vsel %vm2736_vm3, %v2660_v27, -inf  ;;  %v2685_v44 = vrot.slane %v2678_v62, %v5323_v37  ;;  %v2577_v13 = vcombine.high %v2575_v46, %v2575_v46 }
 0x2f7   :  { %v4921_v45 = vpop.f32.mrf.mxu1  ;;  %v2747_v59 = vmax.f32 %v2745_v15, %v2746_v17  ;;  %v2702_v8 = vrot.slane %v2694_v18, %v5323_v37  ;;  %v3625_v16 = vmax.f32 %v3592_v56, 0.0  ;;  %v2468_v31 = vmax.f32 %v2459_v47, 0.0 }
 0x2f8   :  { %v2677_v2 = vcombine.low %v2669_v1, %v2676_v63  ;;  %v2693_v41 = vcombine.low %v2685_v44, %v2692_v38  ;;  %v3597_v55 = vadd.f32 %v6253_v54, %v6191_v48  ;;  %v3602_v36 = vadd.f32 %v6253_v54, %v6203_v39 }
 0x2f9   :  { %v2748_v32 = vrot.slane %v2747_v59, 4  ;;  %v3639_v19 = vcombine.high %v3625_v16, %v3625_v16  ;;  %v3646_v4 = vrot.slane %v3625_v16, %v5291_v40  ;;  %v2578_v24 = vcombine.high %v2468_v31, %v2468_v31 }
 0x2fa   :  { %v2754_v26 = vsel %vm1986_vm1, %v2677_v2, -inf  ;;  %v2755_v35 = vsel %vm2736_vm3, %v2693_v41, -inf  ;;  %v2585_v29 = vrot.slane %v2468_v31, %v5323_v37  ;;  %v3626_v43 = vmax.f32 %v3597_v55, 0.0 }
 0x2fb   :  { %v6277_v10 = vmax.f32 %v2747_v59, %v2748_v32  ;;  %v2756_v42 = vmax.f32 %v2754_v26, %v2755_v35  ;;  %v3653_v48 = vrot.slane %v3639_v19, %v5291_v40  ;;  %v3654_v0 = vcombine.high %v3646_v4, %v3646_v4 }
 0x2fc   :  { %v3662_v39 = vrot.slane %v3646_v4, %v5291_v40  ;;  %v2592_v52 = vrot.slane %v2578_v24, %v5323_v37  ;;  %v2593_v58 = vcombine.high %v2585_v29, %v2585_v29  ;;  %v2695_v25 = vcombine.low %v2577_v13, %v2585_v29 }
 0x2fd   :  { %v2757_v50 = vrot.slane %v2756_v42, 4  ;;  %v3655_v20 = vcombine.high %v3653_v48, %v3653_v48  ;;  %v3669_v23 = vrot.slane %v3653_v48, %v5291_v40  ;;  %v3676_v15 = vrot.slane %v3654_v0, %v5291_v40 }
 0x2fe   :  { %v2594_v57 = vcombine.high %v2592_v52, %v2592_v52  ;;  %v2709_v46 = vrot.slane %v2695_v25, %v5323_v37  ;;  %v2711_v7 = vcombine.low %v2593_v58, %v2592_v52  ;;  %v3688_v27 = vcombine.high %v3626_v43, %v3626_v43 }
 0x2ff   :  { %v6285_v30 = vmax.f32 %v2756_v42, %v2757_v50  ;;  %v3683_v62 = vrot.slane %v3655_v20, %v5291_v40  ;;  %v3957_v38 = vcombine.low %v3662_v39, %v3676_v15  ;;  %v4682_v63 = vcombine.high %v3662_v39, %v3676_v15 }
 0x300   :  { %v2710_v18 = vcombine.low %v2702_v8, %v2709_v46  ;;  %v2718_v56 = vrot.slane %v2711_v7, %v5323_v37  ;;  %v2725_v47 = vrot.slane %v2594_v57, %v5323_v37  ;;  %v3695_v1 = vrot.slane %v3626_v43, %v5291_v40 }
 0x301   :  { %v3959_v17 = vcombine.low %v3669_v23, %v3683_v62  ;;  %v4683_v44 = vcombine.high %v3669_v23, %v3683_v62  ;;  %v3967_v13 = vrot.slane %v3957_v38, %v5291_v40  ;;  %v3974_v45 = vrot.slane %v4682_v63, %v5291_v40 }
 0x302   :  { %v2726_v59 = vcombine.low %v2718_v56, %v2725_v47  ;;  %v2763_v16 = vsel %vm1986_vm1, %v2710_v18, -inf  ;;  %v3702_v31 = vrot.slane %v3688_v27, %v5291_v40  ;;  %v3703_v2 = vcombine.high %v3695_v1, %v3695_v1 }
 0x303   :  { %v3981_v8 = vrot.slane %v3959_v17, %v5291_v40  ;;  %v3988_v41 = vrot.slane %v4683_v44, %v5291_v40  ;;  %v3989_v55 = vcombine.low %v3967_v13, %v3974_v45  ;;  %v3711_v37 = vrot.slane %v3695_v1, %v5291_v40 }
 0x304   :  { %v2764_v32 = vsel %vm2736_vm3, %v2726_v59, -inf  ;;  %v3704_v19 = vcombine.high %v3702_v31, %v3702_v31  ;;  %v3718_v4 = vrot.slane %v3702_v31, %v5291_v40  ;;  %v3725_v24 = vrot.slane %v3703_v2, %v5291_v40 }
 0x305   :  { %v3990_v26 = vcombine.low %v3981_v8, %v3988_v41  ;;  %v3997_v35 = vrot.slane %v3989_v55, %v5291_v40  ;;  %v6302_v29 = vmax.f32 %v2763_v16, %v2764_v32  ;;  %v3627_v43 = vmax.f32 %v3602_v36, 0.0 }
 0x306   :  { %v3732_v42 = vrot.slane %v3704_v19, %v5291_v40  ;;  %v3734_v48 = vcombine.high %v3718_v4, %v3718_v4  ;;  %v4006_v0 = vcombine.low %v3711_v37, %v3725_v24  ;;  %v4684_v39 = vcombine.high %v3711_v37, %v3725_v24 }
 0x307   :  { %v4004_v52 = vrot.slane %v3990_v26, %v5291_v40  ;;  %v4028_v58 = vrot.slane %v3718_v4, %v5291_v40  ;;  %v3737_v25 = vcombine.high %v3627_v43, %v3627_v43  ;;  %v3744_v50 = vrot.slane %v3627_v43, %v5291_v40 }
 0x308   :  { %v4014_v20 = vrot.slane %v4006_v0, %v5291_v40  ;;  %v4021_v23 = vrot.slane %v4684_v39, %v5291_v40  ;;  %v4045_v15 = vcombine.low %v3732_v42, %v3734_v48  ;;  %v3736_v57 = vcombine.high %v3732_v42, %v3732_v42 }
 0x309   :  { %v4005_v46 = vcombine.low %v3997_v35, %v4004_v52  ;;  %v4043_v36 = vrot.slane %v4028_v58, %v5291_v40  ;;  %v3751_v7 = vrot.slane %v3737_v25, %v5291_v40  ;;  %v3752_v27 = vcombine.high %v3744_v50, %v3744_v50 }
 0x30a   :  { %v4029_v62 = vcombine.low %v4014_v20, %v4021_v23  ;;  %v3760_v38 = vrot.slane %v3744_v50, %v5291_v40  ;;  %v4055_v63 = vrot.slane %v4045_v15, %v5291_v40  ;;  %v3607_v18 = vadd.f32 %v6253_v54, %v6216_v6 }
 0x30b   :  { %v4317_v56 = vsel %vm1986_vm1, %v4005_v46, -inf  ;;  %v3753_v47 = vcombine.high %v3751_v7, %v3751_v7  ;;  %v3767_v1 = vrot.slane %v3751_v7, %v5291_v40  ;;  %v3774_v17 = vrot.slane %v3752_v27, %v5291_v40 }
 0x30c   :  { %v4036_v44 = vrot.slane %v4029_v62, %v5291_v40  ;;  %v3782_v13 = vcombine.high %v3760_v38, %v3760_v38  ;;  %v4046_v45 = vcombine.low %v3736_v57, %v3760_v38  ;;  %v3628_v59 = vmax.f32 %v3607_v18, 0.0 }
 0x30d   :  { %v3781_v16 = vrot.slane %v3753_v47, %v5291_v40  ;;  %v3783_v31 = vcombine.high %v3767_v1, %v3767_v1  ;;  %v3784_v2 = vcombine.high %v3774_v17, %v3774_v17  ;;  %v3612_v8 = vadd.f32 %v6253_v54, %v6230_v22 }
 0x30e   :  { %v4044_v6 = vcombine.low %v4036_v44, %v4043_v36  ;;  %v4047_v41 = vcombine.low %v3774_v17, %v3782_v13  ;;  %v4062_v55 = vrot.slane %v4046_v45, %v5291_v40  ;;  %v3786_v37 = vcombine.high %v3628_v59, %v3628_v59 }
 0x30f   :  { %v4048_v32 = vcombine.low %v3784_v2, %v3767_v1  ;;  %v4094_v19 = vcombine.low %v3781_v16, %v3783_v31  ;;  %v3785_v4 = vcombine.high %v3781_v16, %v3781_v16  ;;  %v3793_v24 = vrot.slane %v3628_v59, %v5291_v40 }
 0x310   :  { %v4319_v26 = vsel %vm4318_vm4, %v4044_v6, -inf  ;;  %v4069_v35 = vrot.slane %v4047_v41, %v5291_v40  ;;  %v4077_v43 = vcombine.low %v4055_v63, %v4062_v55  ;;  %v3800_v42 = vrot.slane %v3786_v37, %v5291_v40 }
 0x311   :  { %v6328_v48 = vmax.f32 %v4317_v56, %v4319_v26  ;;  %v4076_v22 = vrot.slane %v4048_v32, %v5291_v40  ;;  %v3801_v0 = vcombine.high %v3793_v24, %v3793_v24  ;;  %v3809_v39 = vrot.slane %v3793_v24, %v5291_v40 }
 0x312   :  { %v4085_v52 = vrot.slane %v4077_v43, %v5291_v40  ;;  %v3802_v58 = vcombine.high %v3800_v42, %v3800_v42  ;;  %v3816_v25 = vrot.slane %v3800_v42, %v5291_v40  ;;  %v4102_v50 = vrot.slane %v4094_v19, %v5291_v40 }
 0x313   :  { %v4078_v20 = vcombine.low %v4069_v35, %v4076_v22  ;;  %v3823_v23 = vrot.slane %v3801_v0, %v5291_v40  ;;  %v4095_v15 = vcombine.low %v3785_v4, %v3809_v39  ;;  %v3629_v57 = vmax.f32 %v3612_v8, 0.0 }
 0x314   :  { %v3830_v46 = vrot.slane %v3802_v58, %v5291_v40  ;;  %v3617_v36 = vadd.f32 %v6253_v54, %v6245_v9  ;;  %v3622_v7 = vadd.f32 %v6253_v54, %v6258_v3  ;;  %v2741_v27 = vrot.slane %v6211_v5, 2 }
 0x315   :  { %v4092_v62 = vrot.slane %v4078_v20, %v5291_v40  ;;  %v4109_v38 = vrot.slane %v4095_v15, %v5291_v40  ;;  %v4116_v63 = vrot.slane %v3823_v23, %v5291_v40  ;;  %v4685_v18 = vcombine.high %v3809_v39, %v3823_v23 }
 0x316   :  { %v4134_v56 = vcombine.low %v3816_v25, %v3830_v46  ;;  %v4686_v47 = vcombine.high %v3816_v25, %v3830_v46  ;;  %v3835_v1 = vcombine.high %v3629_v57, %v3629_v57  ;;  %v3842_v17 = vrot.slane %v3629_v57, %v5291_v40 }
 0x317   :  { %v4093_v44 = vcombine.low %v4085_v52, %v4092_v62  ;;  %v4117_v13 = vcombine.low %v4102_v50, %v4109_v38  ;;  %v4131_v9 = vrot.slane %v4116_v63, %v5291_v40  ;;  %v4143_v54 = vrot.slane %v4685_v18, %v5291_v40 }
 0x318   :  { %v4150_v3 = vrot.slane %v4134_v56, %v5291_v40  ;;  %v4157_v45 = vrot.slane %v4686_v47, %v5291_v40  ;;  %v3849_v59 = vrot.slane %v3835_v1, %v5291_v40  ;;  %v3850_v16 = vcombine.high %v3842_v17, %v3842_v17 }
 0x319   :  { %v4124_v31 = vrot.slane %v4117_v13, %v5291_v40  ;;  %v4327_v2 = vsel %vm1986_vm1, %v4093_v44, -inf  ;;  %v3858_v8 = vrot.slane %v3842_v17, %v5291_v40  ;;  %v3630_v6 = vmax.f32 %v3617_v36, 0.0 }
 0x31a   :  { %v4165_v41 = vcombine.low %v4143_v54, %v4150_v3  ;;  %v3851_v55 = vcombine.high %v3849_v59, %v3849_v59  ;;  %v3865_v37 = vrot.slane %v3849_v59, %v5291_v40  ;;  %v3872_v32 = vrot.slane %v3850_v16, %v5291_v40 }
 0x31b   :  { %v4132_v19 = vcombine.low %v4124_v31, %v4131_v9  ;;  %v3884_v4 = vcombine.high %v3630_v6, %v3630_v6  ;;  %v3891_v24 = vrot.slane %v3630_v6, %v5291_v40  ;;  %v3631_v26 = vmax.f32 %v3622_v7, 0.0 }
 0x31c   :  { %v6358_v35 = vrot.slane %v4165_v41, %v5291_v40  ;;  %v3879_v43 = vrot.slane %v3851_v55, %v5291_v40  ;;  %v3881_v42 = vcombine.high %v3865_v37, %v3865_v37  ;;  %v4136_v22 = vcombine.low %v3858_v8, %v3872_v32 }
 0x31d   :  { %v4328_v0 = vsel %vm4318_vm4, %v4132_v19, -inf  ;;  %v4687_v39 = vcombine.high %v3858_v8, %v3872_v32  ;;  %v3898_v52 = vrot.slane %v3884_v4, %v5291_v40  ;;  %v3899_v58 = vcombine.high %v3891_v24, %v3891_v24 }
 0x31e   :  { %v6363_v25 = vmax.f32 %v4327_v2, %v4328_v0  ;;  %v4164_v50 = vrot.slane %v4136_v22, %v5291_v40  ;;  %v4183_v20 = vcombine.low %v3865_v37, %v3879_v43  ;;  %v4204_v23 = vrot.slane %v3881_v42, %v5291_v40 }
 0x31f   :  { %v4190_v15 = vrot.slane %v4687_v39, %v5291_v40  ;;  %v3883_v57 = vcombine.high %v3879_v43, %v3879_v43  ;;  %v3900_v46 = vcombine.high %v3898_v52, %v3898_v52  ;;  %v3907_v36 = vrot.slane %v3891_v24, %v5291_v40 }
 0x320   :  { %v4166_v7 = vcombine.low %v4157_v45, %v4164_v50  ;;  %v4197_v62 = vrot.slane %v4183_v20, %v5291_v40  ;;  %v4219_v38 = vrot.slane %v4204_v23, %v5291_v40  ;;  %v3914_v63 = vrot.slane %v3898_v52, %v5291_v40 }
 0x321   :  { %v3921_v18 = vrot.slane %v3899_v58, %v5291_v40  ;;  %v3928_v56 = vrot.slane %v3900_v46, %v5291_v40  ;;  %v3929_v47 = vcombine.high %v3907_v36, %v3907_v36  ;;  %v4221_v1 = vcombine.low %v3883_v57, %v3907_v36 }
 0x322   :  { %v4180_v17 = vrot.slane %v4166_v7, %v5291_v40  ;;  %v4205_v44 = vcombine.low %v4190_v15, %v4197_v62  ;;  %v3930_v13 = vcombine.high %v3914_v63, %v3914_v63  ;;  %v3939_v9 = vrot.slane %v3631_v26, %v5291_v40 }
 0x323   :  { %v3931_v54 = vcombine.high %v3921_v18, %v3921_v18  ;;  %v4222_v3 = vcombine.low %v3921_v18, %v3929_v47  ;;  %v4231_v45 = vrot.slane %v4221_v1, %v5291_v40  ;;  %v3932_v59 = vcombine.high %v3928_v56, %v3928_v56 }
 0x324   :  { %v4181_v16 = vcombine.low %v6358_v35, %v4180_v17  ;;  %v4212_v31 = vrot.slane %v4205_v44, %v5291_v40  ;;  %v4224_v2 = vcombine.low %v3928_v56, %v3930_v13  ;;  %v3940_v8 = vcombine.high %v3939_v9, %v3939_v9 }
 0x325   :  { %v4223_v6 = vcombine.low %v3931_v54, %v3914_v63  ;;  %v4238_v41 = vrot.slane %v4222_v3, %v5291_v40  ;;  %v3947_v55 = vrot.slane %v3939_v9, %v5291_v40  ;;  %v2742_v37 = vmax.f32 %v6211_v5, %v2741_v27 }
 0x326   :  { %v4220_v32 = vcombine.low %v4212_v31, %v4219_v38  ;;  %v4252_v19 = vrot.slane %v4224_v2, %v5291_v40  ;;  %v3954_v4 = vrot.slane %v3940_v8, %v5291_v40  ;;  %v2750_v24 = vrot.slane %v6277_v10, 2 }
 0x327   :  { %v4245_v26 = vrot.slane %v4223_v6, %v5291_v40  ;;  %v4253_v35 = vcombine.low %v4231_v45, %v4238_v41  ;;  %v3955_v43 = vcombine.high %v3947_v55, %v3947_v55  ;;  %v4270_v42 = vcombine.low %v3932_v59, %v3947_v55 }
 0x328   :  { %v3956_v22 = vcombine.high %v3954_v4, %v3954_v4  ;;  %v2743_v0 = vrot.slane %v2742_v37, 1  ;;  %v2751_v39 = vmax.f32 %v6277_v10, %v2750_v24  ;;  %v2759_v5 = vrot.slane %v6285_v30, 2 }
 0x329   :  { %v4254_v27 = vcombine.low %v4245_v26, %v4252_v19  ;;  %v4261_v52 = vrot.slane %v4253_v35, %v5291_v40  ;;  %v4271_v58 = vcombine.low %v3954_v4, %v3955_v43  ;;  %v4278_v50 = vrot.slane %v4270_v42, %v5291_v40 }
 0x32a   :  { %v4292_v20 = vrot.slane %v3956_v22, %v5291_v40  ;;  %v2744_v23 = vmax.f32 %v2742_v37, %v2743_v0  ;;  %v2752_v15 = vrot.slane %v2751_v39, 1  ;;  %v2760_v57 = vmax.f32 %v6285_v30, %v2759_v5 }
 0x32b   :  { %v4268_v46 = vrot.slane %v4254_v27, %v5291_v40  ;;  %v4285_v36 = vrot.slane %v4271_v58, %v5291_v40  ;;  %v2766_v10 = vrot.slane %v6302_v29, 4  ;;  %v4321_v7 = vrot.slane %v6328_v48, 4 }
 0x32c   :  { %v4307_v62 = vrot.slane %v4292_v20, %v5291_v40  ;;  %v2753_v38 = vmax.f32 %v2751_v39, %v2752_v15  ;;  %v2761_v63 = vrot.slane %v2760_v57, 1  ;;  %v4330_v18 = vrot.slane %v6363_v25, 4 }
 0x32d   :  { %v4269_v56 = vcombine.low %v4261_v52, %v4268_v46  ;;  %v4293_v47 = vcombine.low %v4278_v50, %v4285_v36  ;;  %v2767_v1 = vmax.f32 %v6302_v29, %v2766_v10  ;;  %v4322_v30 = vmax.f32 %v6328_v48, %v4321_v7 }
 0x32e   :  { %v2762_v17 = vmax.f32 %v2760_v57, %v2761_v63  ;;  %v4369_v44 = vsel %vm4358_vm5, %v2753_v38, %v2744_v23  ;;  %v4331_v13 = vmax.f32 %v6363_v25, %v4330_v18  ;;  %v4336_v9 = vsel %vm1986_vm1, %v4181_v16, -inf }
 0x32f   :  { %v4300_v54 = vrot.slane %v4293_v47, %v5291_v40  ;;  %v2768_v3 = vrot.slane %v2767_v1, 2  ;;  %v4323_v45 = vrot.slane %v4322_v30, 2  ;;  %v4337_v59 = vsel %vm4318_vm4, %v4220_v32, -inf }
 0x330   :  { %v4370_v31 = vsel %vm4360_vm6, %v2762_v17, %v4369_v44  ;;  %v4332_v2 = vrot.slane %v4331_v13, 2  ;;  %v4338_v8 = vmax.f32 %v4336_v9, %v4337_v59  ;;  %v2006_v29 = vsel %vm1986_vm1, %v1832_v33, -inf }
 0x331   :  { %v4308_v48 = vcombine.low %v4300_v54, %v4307_v62  ;;  %v2769_v6 = vmax.f32 %v2767_v1, %v2768_v3  ;;  %v1977_v25 = vcombine.low %v1969_v14, %v1976_v49  ;;  %v4345_v41 = vsel %vm1986_vm1, %v4269_v56, -inf  ;;  %v4421_v56 = vld [vmem:[%s6525_s8 + $0x58] sm:$0xff] }
 0x332   :  { %v4339_v16 = vrot.slane %v4338_v8, 4  ;;  %v1991_v55 = vrot.slane %v6102_v61, 4  ;;  %v2000_v37 = vrot.slane %v6141_v51, 4  ;;  %v4324_v12 = vmax.f32 %v4322_v30, %v4323_v45  ;;  %4923 = vmatpush3.msra.mxu0 %v4421_v56 }
 0x333   :  { %v2770_v32 = vrot.slane %v2769_v6, 1  ;;  %v4346_v21 = vsel %vm4318_vm4, %v4308_v48, -inf  ;;  %v2007_v33 = vsel %vm1988_vm2, %v6185_v60, -inf  ;;  %v4333_v19 = vmax.f32 %v4331_v13, %v4332_v2  ;;  %4924 = vmatprep.subr.mxu0 %v5020_v11  ;;  %v4419_v13 = vld [vmem:[%s6525_s8 + $0x48] sm:$0xff]  ;;  %v4417_v48 = vld [vmem:[%s6525_s8 + $0x38] sm:$0xff] }
 0x334   :  { %v4340_v53 = vmax.f32 %v4338_v8, %v4339_v16  ;;  %v4347_v4 = vmax.f32 %v4345_v41, %v4346_v21  ;;  %v1992_v40 = vmax.f32 %v6102_v61, %v1991_v55  ;;  %v2001_v28 = vmax.f32 %v6141_v51, %v2000_v37  ;;  %v4415_v41 = vld [vmem:[%s6525_s8 + $0x28] sm:$0xff]  ;;  %v4414_v37 = vld [vmem:[%s6525_s8 + $0x20] sm:$0xff] }
 0x335   :  { %v2771_v49 = vmax.f32 %v2769_v6, %v2770_v32  ;;  %v2008_v14 = vmax.f32 %v2006_v29, %v2007_v33  ;;  %v4325_v42 = vrot.slane %v4324_v12, 1  ;;  %v4334_v60 = vrot.slane %v4333_v19, 1  ;;  %v4413_v32 = vld [vmem:[%s6525_s8 + $0x18] sm:$0xff]  ;;  %v4411_v21 = vld [vmem:[%s6525_s8 + $0x8] sm:$0xff]  ;;  %v4410_v33 = vld [vmem:[%s6525_s8] sm:$0xff] }
 0x336   :  { %v4341_v24 = vrot.slane %v4340_v53, 2  ;;  %v4348_v26 = vrot.slane %v4347_v4, 4  ;;  %v1993_v35 = vrot.slane %v1992_v40, 2  ;;  %v2002_v22 = vrot.slane %v2001_v28, 2 }
 0x337   :  { %v4371_v43 = vsel %vm4362_vm7, %v2771_v49, %v4370_v31  ;;  %v2009_v0 = vrot.slane %v2008_v14, 4  ;;  %v2015_v51 = vsel %vm1986_vm1, %v6238_v34, -inf  ;;  %v2016_v58 = vsel %vm1988_vm2, %v1977_v25, -inf  ;;  %v4420_v34 = vld [vmem:[%s6525_s8 + $0x50] sm:$0xff]  ;;  %v4418_v31 = vld [vmem:[%s6525_s8 + $0x40] sm:$0xff] }
 0x338   :  { %4372 = vrot.lane.b32.xlu0 %v4371_v43, %s5027_s7  ;;  %v4342_v39 = vmax.f32 %v4340_v53, %v4341_v24  ;;  %v4349_v5 = vmax.f32 %v4347_v4, %v4348_v26  ;;  %v1994_v27 = vmax.f32 %v1992_v40, %v1993_v35  ;;  %v2003_v61 = vmax.f32 %v2001_v28, %v2002_v22  ;;  %v4416_v25 = vld [vmem:[%s6525_s8 + $0x30] sm:$0xff] }
 0x339   :  { %v2010_v52 = vmax.f32 %v2008_v14, %v2009_v0  ;;  %v2017_v15 = vmax.f32 %v2015_v51, %v2016_v58  ;;  %v4335_v36 = vmax.f32 %v4333_v19, %v4334_v60  ;;  %v4326_v47 = vmax.f32 %v4324_v12, %v4325_v42  ;;  %4925 = vmatpush3.msra.mxu0 %v4420_v34  ;;  %v4412_v12 = vld [vmem:[%s6525_s8 + $0x10] sm:$0xff]  ;;  %v4504_v60 = vld [vmem:[%s6527_s10 + $0x8] sm:$0xff]  ;;  %v4690_v58 = vld [vmem:[%s6528_s11] ss:$0 sm:$0xff] }
 0x33a   :  { %v4343_v50 = vrot.slane %v4342_v39, 1  ;;  %v4350_v20 = vrot.slane %v4349_v5, 2  ;;  %v1995_v23 = vrot.slane %v1994_v27, 1  ;;  %v2004_v57 = vrot.slane %v2003_v61, 1  ;;  %4926 = vmatprep.subr.mxu0 %v5020_v11  ;;  %v4505_v0 = vld [vmem:[%s6527_s10 + $0x10] sm:$0xff] }
 0x33b   :  { %v2011_v46 = vrot.slane %v2010_v52, 2  ;;  %v2018_v7 = vrot.slane %v2017_v15, 4  ;;  %v4379_v54 = vsel %vm4358_vm5, %v4335_v36, %v4326_v47  ;;  %4927 = vmatpush3.msra.mxu0 %v4419_v13 }
 0x33c   :  { %v4351_v10 = vmax.f32 %v4349_v5, %v4350_v20  ;;  %v4344_v62 = vmax.f32 %v4342_v39, %v4343_v50  ;;  %v1996_v38 = vmax.f32 %v1994_v27, %v1995_v23  ;;  %v2005_v63 = vmax.f32 %v2003_v61, %v2004_v57  ;;  %4928 = vmatprep.subr.mxu0 %v5020_v11  ;;  %v4503_v39 = vld [vmem:[%s6527_s10] sm:$0xff] }
 0x33d   :  { %v2012_v18 = vmax.f32 %v2010_v52, %v2011_v46  ;;  %v2019_v30 = vmax.f32 %v2017_v15, %v2018_v7  ;;  %4929 = vmatpush3.msra.mxu0 %v4418_v31  ;;  %v4688_v5 = vld [vmem:[%s6526_s9] ss:$0 sm:$0xff]  ;;  %s5032_s9 = smov [#allocation2]  }
 0x33e   :  { %v4352_v1 = vrot.slane %v4351_v10, 1  ;;  %v4359_v44 = vsel %vm4358_vm5, %v2005_v63, %v1996_v38  ;;  %v4380_v45 = vsel %vm4360_vm6, %v4344_v62, %v4379_v54  ;;  %4930 = vmatprep.subr.mxu0 %v5020_v11  ;;  %s4606_s10 = sshll.u32 %s5032_s9, 4  ;;  %s4607_s10 = int_to_ptr.vmem [resolvable:$true] %s4606_s10 }
 0x33f   :  { %v2013_v17 = vrot.slane %v2012_v18, 1  ;;  %v2020_v3 = vrot.slane %v2019_v30, 2  ;;  %4931 = vmatpush3.msra.mxu0 %v4417_v48  ;;  %s4976_s11 = scalar_lea.vmem %s4607_s10, 32  ;;  %p4981_p1 = scmp.lt.s32.totalorder %s4607_s10, %s4607_s10 }
 0x340   :  { %v4353_v9 = vmax.f32 %v4351_v10, %v4352_v1  ;;  %4932 = vmatprep.subr.mxu0 %v5020_v11  ;;  %p4977_p0 = scmp.ne.s32.totalorder %s4607_s10, %s4976_s11  ;;  %p4982_p2 = scmp.lt.s32.totalorder %s4976_s11, %s4976_s11 }
 0x341   :  { %v2014_v59 = vmax.f32 %v2012_v18, %v2013_v17  ;;  %v2021_v8 = vmax.f32 %v2019_v30, %v2020_v3  ;;  %4933 = vmatpush3.msra.mxu0 %v4416_v25 }
 0x342   :  { %v4381_v2 = vsel %vm4362_vm7, %v4353_v9, %v4380_v45  ;;  %4934 = vmatprep.subr.mxu0 %v5020_v11  ;;  %p4983_p3 = por %p4982_p2, %p4981_p1 }
 0x343   :  { %4382 = vrot.lane.b32.xlu1 %v4381_v2, %s5028_s18  ;;  %v4361_v29 = vsel %vm4360_vm6, %v2014_v59, %v4359_v44  ;;  %v2022_v6 = vrot.slane %v2021_v8, 1  ;;  %4935 = vmatpush3.msra.mxu0 %v4415_v41 }
 0x344   :  { %4936 = vmatprep.subr.mxu0 %v5020_v11  ;;  %p4984_p4 = pnand %p4983_p3, %p4977_p0 }
 0x345   :  { %v2023_v16 = vmax.f32 %v2021_v8, %v2022_v6  ;;  %4937 = vmatpush3.msra.mxu0 %v4414_v37 }
 0x346   :  { %4938 = vmatprep.subr.mxu0 %v5020_v11 }
 0x347   :  { %v4363_v55 = vsel %vm4362_vm7, %v2023_v16, %v4361_v29  ;;  %4939 = vmatpush3.msra.mxu0 %v4413_v32 }
 0x348   :  { %4940 = vmatprep.subr.mxu0 %v5020_v11 }
 0x349   :  { %4941 = vmatpush3.msra.mxu0 %v4412_v12 }
 0x34a   :  { %4942 = vmatprep.subr.mxu0 %v5020_v11 }
 0x34b   :  { %4943 = vmatpush3.msra.mxu0 %v4411_v21 }
 0x34c   :  { %4944 = vmatprep.subr.mxu0 %v5020_v11 }
 0x34d   :  { %4945 = vmatpush3.msra.mxu0 %v4410_v33 }
 0x34e   :  { %4949 = vmatprep.subr.mxu0 %v5020_v11 }
 0x3aa   :  { %v4373_v19 = vpop.permute.xlu0 %4372 }
 0x3ab   :  { %v4385_v53 = vsel %vm1986_vm1, %v4363_v55, %v4373_v19 }
 0x3b5   :  { %v4383_v4 = vpop.permute.xlu1 %4382 }
 0x3b6   :  { %v4387_v40 = vsel %vm4386_vm8, %v4385_v53, %v4383_v4 }
 0x3b7   :  { %v4389_v49 = vrot.slane %v4387_v40, 2 }
 0x3b9   :  { %4393 = vrot.lane.b32.xlu0 %v4389_v49, %s5029_s30  ;;  %v4391_v28 = vsub.f32 %v4387_v40, %v4389_v49  ;;  %v4392_v14 = vmul.f32 %v4389_v49, %v4387_v40 }
 0x3bb   :  { %4397 = vrot.lane.b32.xlu1 %v4391_v28, %s5030_s15 }
 0x3bd   :  { %4401 = vrot.lane.b32.xlu0 %v4392_v14, %s5031_s0 }
 0x42b   :  { %v4394_v24 = vpop.permute.xlu0 %4393 }
 0x42c   :  { %v4405_v26 = vsel %vm4404_vm9, %v4387_v40, %v4394_v24 }
 0x42d   :  { %v4398_v35 = vpop.permute.xlu1 %4397 }
 0x42e   :  { %v4407_v43 = vsel %vm4406_vm10, %v4405_v26, %v4398_v35 }
 0x42f   :  { %v4402_v42 = vpop.permute.xlu0 %4401 }
 0x430   :  { %v4409_v22 = vsel %vm4408_vm11, %v4407_v43, %v4402_v42 }
 0x431   :  { %4947 = vmatmul.mubr.msk.f32.vlgmr.msra.gmra.mxu0 %vm2347_vm0, %v4409_v22 }
 0x432   :  { %4955 = vmatprep.mubr.msk.f32.mxu0 %vm5024_vm13, %v5020_v11  ;;  %4950 = vmatpush3.msra.mxu0 %v4505_v0 }
 0x433   :  { %4951 = vmatprep.subr.mxu0 %v5020_v11 }
 0x434   :  { %4952 = vmatpush3.msra.mxu0 %v4504_v60 }
 0x435   :  { %4953 = vmatprep.subr.mxu0 %v5020_v11 }
 0x436   :  { %4954 = vmatpush3.msra.mxu0 %v4503_v39 }
 0x4f1   :  { %v4498_v27 = vpop.f32.mrf.mxu0 }
 0x4f2   :  { %v4499_v61 = vadd.f32 %v4688_v5, %v4498_v27 }
 0x4f3   :  { %v4948_v52 = vpop.f32.mrf.mxu0 }
 0x4f4   :  { %v4502_v51 = vmax.f32 %v4499_v61, 0.0 }
 0x4f6   :  { %4956 = vmatmul.mubr.msk.f32.vlgmr.msra.gmra.mxu0 %vm4404_vm9, %v4502_v51 }
 0x5b6   :  { %v4582_v50 = vpop.f32.mrf.mxu0 }
 0x5b7   :  { %v4583_v20 = vadd.f32 %v4690_v58, %v4582_v50 }
 0x5b8   :  { %v4957_v23 = vpop.f32.mrf.mxu0 }
 0x5b9   :  { %v4588_v11 = vsel %vm4586_vm12, %v4583_v20, -inf  ;;  %4587 = vst.msk [vmem:[#allocation2] sm:$0x3] %vm4586_vm12, %v4583_v20 }
 0x5ba   :  { %4589 = vmax.xlane.f32.xlu1 %v4588_v11 }
 0x643   :  { %v4590_v15 = vpop.xlane.xlu1 %4589 }
 0x644   :  { %v4591_v57 = vsub.f32 %v4583_v20, %v4590_v15 }
 0x646   :  { %v4592_v46 = vmul.f32 1.442695, %v4591_v57 }
 0x648   :  { %4972 = vpow2.f32 %v4592_v46 }
 0x655   :  { %v4973_v36 = vpop.eup %4972 }
 0x656   :  { %v4594_v10 = vsel %vm4586_vm12, %v4973_v36, 0.0 }
 0x657   :  { %4595 = vadd.xlane.f32.xlu0 %v4594_v10 }
 0x658   :  { %4987 = shalt.err (!%p4984_p4)
}
 0x659   :  { %4609 = dma.vmem_to_hbm [thread:$0]  %s4607_s10, 32, %s6529_s12, [#allocation3]  }
 0x65a   :  { %s5033_s24 = smov [#allocation4]  }
 0x65b   :  { %s4616_s25 = sshll.u32 %s5033_s24, 4  ;;  %s4617_s25 = int_to_ptr.vmem [resolvable:$true] %s4616_s25 }
 0x65c   :  { %s4996_s26 = scalar_lea.vmem %s4617_s25, 32  ;;  %p5001_p6 = scmp.lt.s32.totalorder %s4617_s25, %s4617_s25 }
 0x65d   :  { %p4997_p5 = scmp.ne.s32.totalorder %s4617_s25, %s4996_s26  ;;  %p5002_p7 = scmp.lt.s32.totalorder %s4996_s26, %s4996_s26 }
 0x65f   :  { %p5003_p8 = por %p5002_p7, %p5001_p6 }
 0x661   :  { %p5004_p9 = pnand %p5003_p8, %p4997_p5 }
 0x6e0   :  { %v4596_v7 = vpop.xlane.xlu0 %4595 }
 0x6e1   :  { %4974 = vrcp.f32 %v4596_v7 }
 0x6ee   :  { %v4975_v62 = vpop.eup %4974 }
 0x6ef   :  { %v4598_v38 = vmul.f32 %v4975_v62, %v4973_v36 }
 0x6f1   :  { %4599 = vst.msk [vmem:[#allocation4] sm:$0x3] %vm4586_vm12, %v4598_v38 }
 0x6f2   :  { %5007 = shalt.err (!%p5004_p9)
}
 0x6f3   :  { %4619 = dma.vmem_to_hbm [thread:$0]  %s4617_s25, 32, %s6530_s13, [#allocation5]  }
 0x6f4   :  { %5016 = dma.done.wait [#allocation3], 32  }
 0x6f5   :  { %5017 = vsyncadd [#allocation3], 4294967264 }
 0x6f6   :  { %5018 = dma.done.wait [#allocation5], 32  }
 0x6f7   :  { %5019 = vsyncadd [#allocation5], 4294967264 }
 0x6f8   :  { %4626 = vsyncpa [#allocation3], 1 }
 0x6f9   :  { %4627 = vsyncpa [#allocation5], 1 }

</bundles_post_ra>
